<compile_context>
chip_gen: v7x
topology: tpu7x:2x2x1
jax: 0.10.0
libtpu: 0.0.40
codegen_flags: <defaults>
</compile_context>

<pallas_src>
import functools

import jax
import jax.numpy as jnp
from jax.experimental import pallas as pl
from jax.experimental.pallas import tpu as pltpu


def _cross_attention_kernel(x_ref, wq_ref, wk_ref, wv_ref, out_ref, *, exp_dtype):
    bm = x_ref.shape[1]

    x_src = x_ref[0]                                             # (bm, in)
    x_tag = x_ref[1]                                             # (bm, in)

    # Queries always come from src; the softmax scale is folded into Wq.
    q = jnp.dot(x_src, wq_ref[...], preferred_element_type=jnp.float32)   # (bm, D)
    q_pos = q >= 0.0

    def attend(x_kv):
        k = jnp.dot(x_kv, wk_ref[...], preferred_element_type=jnp.float32)  # (bm, D)
        v = jnp.dot(x_kv, wv_ref[...], preferred_element_type=jnp.float32)  # (bm, D)
        # Exact row max of s[i, j] = q[i] * k[j] derived from the factors,
        # avoiding an XLU reduce over the (bm, D, D) score tensor:
        kmax = jnp.max(k, axis=-1, keepdims=True)                # (bm, 1)
        kmin = jnp.min(k, axis=-1, keepdims=True)                # (bm, 1)
        m = jnp.where(q_pos, q * kmax, q * kmin)                 # (bm, D)
        s = q[:, :, None] * k[:, None, :]                        # (bm, D, D)
        # bf16 exp on v6e/v7x EUP; num/den accumulation stays in f32.
        e = jnp.exp((s - m[:, :, None]).astype(exp_dtype)).astype(jnp.float32)
        num = jnp.sum(e * v[:, None, :], axis=-1)                # (bm, D)
        den = jnp.sum(e, axis=-1)                                # (bm, D)
        return num * pl.reciprocal(den, approx=True)             # (bm, D)

    # Single lane-dense (2*bm, D) output block: src rows then tag rows.
    out_ref[:bm, :] = attend(x_src).astype(out_ref.dtype)
    out_ref[bm:, :] = attend(x_tag).astype(out_ref.dtype)


def _round_up(x, m):
    return (x + m - 1) // m * m


def _pick_bm(B, in_d, D):
    # Dominant per-step VMEM: a handful of live (bm, D, D) f32 temporaries.
    # Keep them under ~10 MiB so the kernel fits v5e's 16 MiB default scoped
    # VMEM and well under v7x's 64 MiB physical VMEM.
    temp_budget = 10 * 1024 * 1024
    bytes_per_row = (4 * D * D + 4 * in_d + 8 * D) * 4
    bm = temp_budget // max(bytes_per_row, 1)
    bm = int(max(8, min(128, (bm // 8) * 8)))
    b8 = _round_up(B, 8)
    if b8 <= bm:                       # tiny batch: one tile, no wasted padding
        bm = b8
    return bm


def _use_bf16_exp():
    # bf16 EUP (exp) path exists on v6e / v7x; v5e and older stay f32.
    try:
        kind = jax.devices()[0].device_kind.lower()
    except Exception:
        return False
    return any(t in kind for t in ("v6", "v7", "7x", "trillium"))


def cross_attention(src, tag, wq_t, wk_t, wv_t, in_dim):
    """src, tag: (B, in_dim). wq_t / wk_t / wv_t: (in_dim, D) (pre-transposed)."""
    B, in_d = src.shape
    D = wq_t.shape[1]
    scale = float(in_dim) ** (-0.5)

    bm = _pick_bm(B, in_d, D)
    B_pad = _round_up(B, bm)
    if B_pad != B:
        pad = ((0, B_pad - B), (0, 0))
        src_in = jnp.pad(src, pad)
        tag_in = jnp.pad(tag, pad)
    else:
        src_in, tag_in = src, tag
    x = jnp.stack([src_in, tag_in], axis=0)                      # (2, B_pad, in)

    wq_scaled = wq_t * scale                                     # fold softmax scale

    grid = (B_pad // bm,)
    n_tiles = grid[0]

    exp_dtype = jnp.bfloat16 if _use_bf16_exp() else jnp.float32
    kernel = functools.partial(_cross_attention_kernel, exp_dtype=exp_dtype)

    # VMEM estimate: double-buffered x/out tiles + weights + score/exp temps.
    est_bytes = 4 * (2 * 2 * bm * in_d          # x tiles (2 planes, double-buffered)
                     + 2 * 2 * bm * D           # out tiles (double-buffered)
                     + 2 * 3 * in_d * D         # weights (double-buffered)
                     + 5 * bm * D * D           # live (bm, D, D) temporaries
                     + 8 * bm * D)              # small (bm, D) temporaries
    vmem_limit = int(min(max(2 * est_bytes, 16 * 1024 * 1024), 32 * 1024 * 1024))

    flops = 2 * 5 * B_pad * in_d * D + 2 * 5 * B_pad * D * D
    transcendentals = 2 * B_pad * D * D + 2 * B_pad * D
    bytes_accessed = 4 * (x.size + 3 * in_d * D + 2 * B_pad * D)

    out = pl.pallas_call(
        kernel,
        out_shape=jax.ShapeDtypeStruct((2 * B_pad, D), jnp.float32),
        grid_spec=pltpu.PrefetchScalarGridSpec(
            num_scalar_prefetch=0,
            grid=grid,
            in_specs=[
                pl.BlockSpec((2, bm, in_d), lambda i: (0, i, 0)),
                pl.BlockSpec((in_d, D), lambda i: (0, 0)),
                pl.BlockSpec((in_d, D), lambda i: (0, 0)),
                pl.BlockSpec((in_d, D), lambda i: (0, 0)),
            ],
            out_specs=pl.BlockSpec((2 * bm, D), lambda i: (i, 0)),
        ),
        compiler_params=pltpu.CompilerParams(
            dimension_semantics=("parallel",),
            vmem_limit_bytes=vmem_limit,
        ),
        cost_estimate=pl.CostEstimate(
            flops=flops,
            transcendentals=transcendentals,
            bytes_accessed=bytes_accessed,
        ),
    )(x, wq_scaled, wk_t, wv_t)

    # Per tile the block is [src rows ; tag rows] -> split in the wrapper.
    out = out.reshape(n_tiles, 2, bm, D)
    src_res = out[:, 0].reshape(B_pad, D)[:B]
    tag_res = out[:, 1].reshape(B_pad, D)[:B]
    return src_res, tag_res


def _reference(src, tag, wq_t, wk_t, wv_t, in_dim):
    scale = float(in_dim) ** (-0.5)
    q, sk, sv = src @ wq_t, src @ wk_t, src @ wv_t
    tk, tv = tag @ wk_t, tag @ wv_t

    def attend(k, v):
        s = jnp.einsum('bi,bj->bij', q, k) * scale
        a = jax.nn.softmax(s, axis=-1)
        return jnp.einsum('bij,bj->bi', a, v)

    return attend(sk, sv), attend(tk, tv)


if __name__ == "__main__":
    # Small shapes consistent with the module (k_dim == v_dim required by the
    # original einsum contraction).
    B, in_dim, k_dim, v_dim, num_heads = 2, 32, 8, 8, 3
    D = num_heads * k_dim

    key = jax.random.PRNGKey(0)
    ks_, kt_, kq_, kk_, kv_ = jax.random.split(key, 5)
    src = jax.random.normal(ks_, (B, in_dim), dtype=jnp.float32)
    tag = jax.random.normal(kt_, (B, in_dim), dtype=jnp.float32)
    # nn.Linear weights are (out, in); generate deterministically and transpose.
    wq = jax.random.normal(kq_, (num_heads * k_dim, in_dim), dtype=jnp.float32) * 0.1
    wk = jax.random.normal(kk_, (num_heads * k_dim, in_dim), dtype=jnp.float32) * 0.1
    wv = jax.random.normal(kv_, (num_heads * v_dim, in_dim), dtype=jnp.float32) * 0.1
    wq_t, wk_t, wv_t = wq.T, wk.T, wv.T

    src_res, tag_res = cross_attention(src, tag, wq_t, wk_t, wv_t, in_dim)
    jax.block_until_ready((src_res, tag_res))

    ref_src, ref_tag = _reference(src, tag, wq_t, wk_t, wv_t, in_dim)
    assert src_res.shape == (B, D) and tag_res.shape == (B, D)
    # Tolerance: approx EUP reciprocal everywhere; bf16 exp on v6e/v7x.
    tol = 2e-2 if _use_bf16_exp() else 2e-3
    assert jnp.allclose(src_res, ref_src, atol=tol, rtol=tol)
    assert jnp.allclose(tag_res, ref_tag, atol=tol, rtol=tol)

    print("KERNEL_OK")
</pallas_src>

<mosaic_0001>
module attributes {stable_mosaic.version = 11 : i64} {
  func.func @_cross_attention_kernel(%arg0: i32, %arg1: memref<2x8x32xf32, #tpu.memory_space<vmem>>, %arg2: memref<32x24xf32, #tpu.memory_space<vmem>>, %arg3: memref<32x24xf32, #tpu.memory_space<vmem>>, %arg4: memref<32x24xf32, #tpu.memory_space<vmem>>, %arg5: memref<16x24xf32, #tpu.memory_space<vmem>>) attributes {dimension_semantics = [#tpu.dimension_semantics<parallel>], iteration_bounds = array<i64: 1>, scalar_prefetch = 0 : i64, scratch_operands = 0 : i64, tpu.core_type = #tpu.core_type<tc>, window_params = [{transform_indices = @transform_0, window_bounds = array<i64: 2, 8, 32>}, {pipeline_mode = #tpu.pipeline_mode<synchronous>, transform_indices = @transform_1, window_bounds = array<i64: 32, 24>}, {pipeline_mode = #tpu.pipeline_mode<synchronous>, transform_indices = @transform_2, window_bounds = array<i64: 32, 24>}, {pipeline_mode = #tpu.pipeline_mode<synchronous>, transform_indices = @transform_3, window_bounds = array<i64: 32, 24>}, {transform_indices = @transform_4, window_bounds = array<i64: 16, 24>}]} {
    %c0 = arith.constant 0 : index
    %c0_0 = arith.constant 0 : index
    %c0_1 = arith.constant 0 : index
    %0 = vector.load %arg1[%c0, %c0_0, %c0_1] : memref<2x8x32xf32, #tpu.memory_space<vmem>>, vector<1x8x32xf32>
    %1 = vector.shape_cast %0 : vector<1x8x32xf32> to vector<8x32xf32>
    %c1 = arith.constant 1 : index
    %c0_2 = arith.constant 0 : index
    %c0_3 = arith.constant 0 : index
    %2 = vector.load %arg1[%c1, %c0_2, %c0_3] : memref<2x8x32xf32, #tpu.memory_space<vmem>>, vector<1x8x32xf32>
    %3 = vector.shape_cast %2 : vector<1x8x32xf32> to vector<8x32xf32>
    %c0_4 = arith.constant 0 : index
    %c0_5 = arith.constant 0 : index
    %4 = vector.load %arg2[%c0_4, %c0_5] : memref<32x24xf32, #tpu.memory_space<vmem>>, vector<32x24xf32>
    %cst = arith.constant dense<0.000000e+00> : vector<8x24xf32>
    %5 = tpu.matmul %1, %4, %cst {dimension_numbers = #tpu.dot_dimension_numbers<[1], [0], [0], [1], [0, 0, 1, 1], [], []>} : vector<8x32xf32>, vector<32x24xf32>, vector<8x24xf32> -> vector<8x24xf32>
    %cst_6 = arith.constant 0.000000e+00 : f32
    %6 = vector.broadcast %cst_6 : f32 to vector<8x24xf32>
    %7 = arith.cmpf oge, %5, %6 : vector<8x24xf32>
    %c0_7 = arith.constant 0 : index
    %c0_8 = arith.constant 0 : index
    %8 = vector.load %arg3[%c0_7, %c0_8] : memref<32x24xf32, #tpu.memory_space<vmem>>, vector<32x24xf32>
    %cst_9 = arith.constant dense<0.000000e+00> : vector<8x24xf32>
    %9 = tpu.matmul %1, %8, %cst_9 {dimension_numbers = #tpu.dot_dimension_numbers<[1], [0], [0], [1], [0, 0, 1, 1], [], []>} : vector<8x32xf32>, vector<32x24xf32>, vector<8x24xf32> -> vector<8x24xf32>
    %c0_10 = arith.constant 0 : index
    %c0_11 = arith.constant 0 : index
    %10 = vector.load %arg4[%c0_10, %c0_11] : memref<32x24xf32, #tpu.memory_space<vmem>>, vector<32x24xf32>
    %cst_12 = arith.constant dense<0.000000e+00> : vector<8x24xf32>
    %11 = tpu.matmul %1, %10, %cst_12 {dimension_numbers = #tpu.dot_dimension_numbers<[1], [0], [0], [1], [0, 0, 1, 1], [], []>} : vector<8x32xf32>, vector<32x24xf32>, vector<8x24xf32> -> vector<8x24xf32>
    %cst_13 = arith.constant dense<0xFF800000> : vector<8xf32>
    %12 = vector.multi_reduction <maximumf>, %9, %cst_13 [1] : vector<8x24xf32> to vector<8xf32>
    %13 = vector.shape_cast %12 : vector<8xf32> to vector<8x1xf32>
    %cst_14 = arith.constant dense<0x7F800000> : vector<8xf32>
    %14 = vector.multi_reduction <minimumf>, %9, %cst_14 [1] : vector<8x24xf32> to vector<8xf32>
    %15 = vector.shape_cast %14 : vector<8xf32> to vector<8x1xf32>
    %16 = vector.broadcast %13 : vector<8x1xf32> to vector<8x24xf32>
    %17 = arith.mulf %5, %16 : vector<8x24xf32>
    %18 = vector.broadcast %15 : vector<8x1xf32> to vector<8x24xf32>
    %19 = arith.mulf %5, %18 : vector<8x24xf32>
    %20 = arith.select %7, %17, %19 : vector<8x24xi1>, vector<8x24xf32>
    %21 = vector.shape_cast %5 : vector<8x24xf32> to vector<8x24x1xf32>
    %22 = vector.shape_cast %9 : vector<8x24xf32> to vector<8x1x24xf32>
    %23 = vector.broadcast %21 : vector<8x24x1xf32> to vector<8x24x24xf32>
    %24 = vector.broadcast %22 : vector<8x1x24xf32> to vector<8x24x24xf32>
    %25 = arith.mulf %23, %24 : vector<8x24x24xf32>
    %26 = vector.shape_cast %20 : vector<8x24xf32> to vector<8x24x1xf32>
    %27 = vector.broadcast %26 : vector<8x24x1xf32> to vector<8x24x24xf32>
    %28 = arith.subf %25, %27 : vector<8x24x24xf32>
    %29 = math.exp %28 : vector<8x24x24xf32>
    %30 = vector.shape_cast %11 : vector<8x24xf32> to vector<8x1x24xf32>
    %31 = vector.broadcast %30 : vector<8x1x24xf32> to vector<8x24x24xf32>
    %32 = arith.mulf %29, %31 : vector<8x24x24xf32>
    %cst_15 = arith.constant dense<0.000000e+00> : vector<8x24xf32>
    %33 = vector.multi_reduction <add>, %32, %cst_15 [2] : vector<8x24x24xf32> to vector<8x24xf32>
    %cst_16 = arith.constant dense<0.000000e+00> : vector<8x24xf32>
    %34 = vector.multi_reduction <add>, %29, %cst_16 [2] : vector<8x24x24xf32> to vector<8x24xf32>
    %35 = tpu.reciprocal %34 {approx = true} : vector<8x24xf32> -> vector<8x24xf32>
    %36 = arith.mulf %33, %35 : vector<8x24xf32>
    %c0_17 = arith.constant 0 : index
    %c0_18 = arith.constant 0 : index
    %37 = vector.load %arg5[%c0_17, %c0_18] : memref<16x24xf32, #tpu.memory_space<vmem>>, vector<8x24xf32>
    tpu.vector_store %arg5[%c0_17, %c0_18], %36 {strides = array<i32>} : memref<16x24xf32, #tpu.memory_space<vmem>>, vector<8x24xf32>,
    %c0_19 = arith.constant 0 : index
    %c0_20 = arith.constant 0 : index
    %38 = vector.load %arg3[%c0_19, %c0_20] : memref<32x24xf32, #tpu.memory_space<vmem>>, vector<32x24xf32>
    %cst_21 = arith.constant dense<0.000000e+00> : vector<8x24xf32>
    %39 = tpu.matmul %3, %38, %cst_21 {dimension_numbers = #tpu.dot_dimension_numbers<[1], [0], [0], [1], [0, 0, 1, 1], [], []>} : vector<8x32xf32>, vector<32x24xf32>, vector<8x24xf32> -> vector<8x24xf32>
    %c0_22 = arith.constant 0 : index
    %c0_23 = arith.constant 0 : index
    %40 = vector.load %arg4[%c0_22, %c0_23] : memref<32x24xf32, #tpu.memory_space<vmem>>, vector<32x24xf32>
    %cst_24 = arith.constant dense<0.000000e+00> : vector<8x24xf32>
    %41 = tpu.matmul %3, %40, %cst_24 {dimension_numbers = #tpu.dot_dimension_numbers<[1], [0], [0], [1], [0, 0, 1, 1], [], []>} : vector<8x32xf32>, vector<32x24xf32>, vector<8x24xf32> -> vector<8x24xf32>
    %cst_25 = arith.constant dense<0xFF800000> : vector<8xf32>
    %42 = vector.multi_reduction <maximumf>, %39, %cst_25 [1] : vector<8x24xf32> to vector<8xf32>
    %43 = vector.shape_cast %42 : vector<8xf32> to vector<8x1xf32>
    %cst_26 = arith.constant dense<0x7F800000> : vector<8xf32>
    %44 = vector.multi_reduction <minimumf>, %39, %cst_26 [1] : vector<8x24xf32> to vector<8xf32>
    %45 = vector.shape_cast %44 : vector<8xf32> to vector<8x1xf32>
    %46 = vector.broadcast %43 : vector<8x1xf32> to vector<8x24xf32>
    %47 = arith.mulf %5, %46 : vector<8x24xf32>
    %48 = vector.broadcast %45 : vector<8x1xf32> to vector<8x24xf32>
    %49 = arith.mulf %5, %48 : vector<8x24xf32>
    %50 = arith.select %7, %47, %49 : vector<8x24xi1>, vector<8x24xf32>
    %51 = vector.shape_cast %5 : vector<8x24xf32> to vector<8x24x1xf32>
    %52 = vector.shape_cast %39 : vector<8x24xf32> to vector<8x1x24xf32>
    %53 = vector.broadcast %51 : vector<8x24x1xf32> to vector<8x24x24xf32>
    %54 = vector.broadcast %52 : vector<8x1x24xf32> to vector<8x24x24xf32>
    %55 = arith.mulf %53, %54 : vector<8x24x24xf32>
    %56 = vector.shape_cast %50 : vector<8x24xf32> to vector<8x24x1xf32>
    %57 = vector.broadcast %56 : vector<8x24x1xf32> to vector<8x24x24xf32>
    %58 = arith.subf %55, %57 : vector<8x24x24xf32>
    %59 = math.exp %58 : vector<8x24x24xf32>
    %60 = vector.shape_cast %41 : vector<8x24xf32> to vector<8x1x24xf32>
    %61 = vector.broadcast %60 : vector<8x1x24xf32> to vector<8x24x24xf32>
    %62 = arith.mulf %59, %61 : vector<8x24x24xf32>
    %cst_27 = arith.constant dense<0.000000e+00> : vector<8x24xf32>
    %63 = vector.multi_reduction <add>, %62, %cst_27 [2] : vector<8x24x24xf32> to vector<8x24xf32>
    %cst_28 = arith.constant dense<0.000000e+00> : vector<8x24xf32>
    %64 = vector.multi_reduction <add>, %59, %cst_28 [2] : vector<8x24x24xf32> to vector<8x24xf32>
    %65 = tpu.reciprocal %64 {approx = true} : vector<8x24xf32> -> vector<8x24xf32>
    %66 = arith.mulf %63, %65 : vector<8x24xf32>
    %c8 = arith.constant 8 : index
    %c0_29 = arith.constant 0 : index
    %67 = vector.load %arg5[%c8, %c0_29] : memref<16x24xf32, #tpu.memory_space<vmem>>, vector<8x24xf32>
    tpu.vector_store %arg5[%c8, %c0_29], %66 {strides = array<i32>} : memref<16x24xf32, #tpu.memory_space<vmem>>, vector<8x24xf32>,
    return
  }
  func.func @transform_0(%arg0: i32) -> (i32, i32, i32) {
    %c0_i32 = arith.constant 0 : i32
    %c0_i32_0 = arith.constant 0 : i32
    %c0_i32_1 = arith.constant 0 : i32
    return %c0_i32, %arg0, %c0_i32_0 : i32, i32, i32
  }
  func.func @transform_1(%arg0: i32) -> (i32, i32) {
    %c0_i32 = arith.constant 0 : i32
    %c0_i32_0 = arith.constant 0 : i32
    %c0_i32_1 = arith.constant 0 : i32
    return %c0_i32, %c0_i32_0 : i32, i32
  }
  func.func @transform_2(%arg0: i32) -> (i32, i32) {
    %c0_i32 = arith.constant 0 : i32
    %c0_i32_0 = arith.constant 0 : i32
    %c0_i32_1 = arith.constant 0 : i32
    return %c0_i32, %c0_i32_0 : i32, i32
  }
  func.func @transform_3(%arg0: i32) -> (i32, i32) {
    %c0_i32 = arith.constant 0 : i32
    %c0_i32_0 = arith.constant 0 : i32
    %c0_i32_1 = arith.constant 0 : i32
    return %c0_i32, %c0_i32_0 : i32, i32
  }
  func.func @transform_4(%arg0: i32) -> (i32, i32) {
    %c0_i32 = arith.constant 0 : i32
    %c0_i32_0 = arith.constant 0 : i32
    return %arg0, %c0_i32 : i32, i32
  }
}

</mosaic_0001>

<bundles_post_ra>
// kernel: tpu_custom_call.1
= control target key start
LH: loop header
LB: loop body
LE: loop exit
PB: predicated region body
PF: predicated region fallthrough
CT: control target
= control target key end

     0   :  { %v2420_v3 = vmov 0.0|0.0   ;;  %vm2421_vm0 = vmmov 0   ;;  %v2422_v11 = vmov 0.0   ;;  %s3440_s0 = inlined_call_operand.vmem [shape: f32[2,8,32], index: 0, kind: input, shape index: {}]   ;;  %s3441_s1 = inlined_call_operand.vmem [shape: f32[32,24], index: 1, kind: input, shape index: {}]   ;;  %s3442_s2 = inlined_call_operand.vmem [shape: f32[32,24], index: 2, kind: input, shape index: {}]   ;;  %s3443_s3 = inlined_call_operand.vmem [shape: f32[32,24], index: 3, kind: input, shape index: {}]   ;;  %s3444_s4 = inlined_call_operand.hbm [shape: f32[16,24], index: 4, kind: output, shape index: {}]  }
   0x1   :  { %v21_v0 = vld [vmem:[%s3441_s1] sm:$0xff]  ;;  %v22_v1 = vld [vmem:[%s3441_s1 + $0x8] sm:$0xff]  ;;  %2167 = vmatprep.subr.bf16.mxu0 %v2420_v3  ;;  %2173 = vmatprep.subr.bf16.mxu1 %v2420_v3  ;;  %v23_v6 = vld [vmem:[%s3441_s1 + $0x10] sm:$0xff] }
   0x2   :  { %v100_v2 = vld [vmem:[%s3442_s2] sm:$0xff]  ;;  %v2168_v4 = vpack.c.bf16 %v22_v1, %v21_v0  ;;  %v101_v5 = vld [vmem:[%s3442_s2 + $0x8] sm:$0xff]  ;;  %v24_v7 = vld [vmem:[%s3441_s1 + $0x18] sm:$0xff]  ;;  %2120 = vmatprep.mubr.msk.f32.mxu0 %vm2421_vm0, %v2422_v11  ;;  %2131 = vmatprep.mubr.msk.f32.mxu1 %vm2421_vm0, %v2422_v11 }
   0x3   :  { %v2174_v8 = vpack.c.bf16 %v101_v5, %v100_v2  ;;  %v102_v9 = vld [vmem:[%s3442_s2 + $0x10] sm:$0xff]  ;;  %v103_v10 = vld [vmem:[%s3442_s2 + $0x18] sm:$0xff]  ;;  %v2171_v12 = vpack.c.bf16 %v24_v7, %v23_v6 }
   0x4   :  { %2169 = vmatpush3.bf16.msra.mxu0 %v2168_v4 }
   0x5   :  { %9 = vsyncpa [#allocation3], 0  ;;  %2175 = vmatpush3.bf16.msra.mxu1 %v2174_v8  ;;  %2170 = vmatprep.subr.bf16.mxu0 %v2420_v3  ;;  %v2177_v13 = vpack.c.bf16 %v103_v10, %v102_v9  ;;  %v18_v14 = vld [vmem:[%s3440_s0] sm:$0xff]  ;;  %vm25_vm1 = vcmask 261120   ;;  %v2081_v15 = vld [vmem:[%s3440_s0 + $0x8] sm:$0xff]  ;;  %v3445_v22 = vlaneseq  ;;  %vm248_vm2 = vcmask 195584  }
   0x6   :  { %2176 = vmatprep.subr.bf16.mxu1 %v2420_v3  ;;  %v174_v16 = vld [vmem:[%s3443_s3] sm:$0xff]  ;;  %v175_v17 = vld [vmem:[%s3443_s3 + $0x8] sm:$0xff]  ;;  %v176_v19 = vld [vmem:[%s3443_s3 + $0x10] sm:$0xff]  ;;  %vm1025_vm4 = vcmask 130112   ;;  %vm1032_vm5 = vcmask 195712   ;;  %vm1132_vm6 = vcmask 1041409  }
   0x7   :  { %v2180_v18 = vpack.c.bf16 %v175_v17, %v174_v16  ;;  %v177_v20 = vld [vmem:[%s3443_s3 + $0x18] sm:$0xff]  ;;  %v2505_v23 = vshrl.u32 %v3445_v22, 7  ;;  %vm1134_vm7 = vcmask 1042434   ;;  %vm1136_vm8 = vcmask 1043459   ;;  %s2424_s0 = smov [#allocation2]  }
   0x8   :  { %2172 = vmatpush3.bf16.msra.mxu0 %v2171_v12  ;;  %v2183_v21 = vpack.c.bf16 %v177_v20, %v176_v19  ;;  %vm1138_vm9 = vcmask 1044484   ;;  %vm1140_vm10 = vcmask 1045509   ;;  %vm1142_vm11 = vcmask 1046534   ;;  %s2070_s3 = sshll.u32 %s2424_s0, 4  ;;  %s2071_s3 = int_to_ptr.vmem [resolvable:$true] %s2070_s3 }
   0x9   :  { %2178 = vmatpush3.bf16.msra.mxu1 %v2177_v13  ;;  %2179 = vmatprep.subr.bf16.mxu0 %v2420_v3  ;;  %3459 = vst [vmem:[#allocation5_spill] sm:$0xff] %v2505_v23  ;;  %v2508_v24 = vsub.s32 0, %v2505_v23  ;;  %v2521_v32 = vsub.s32 1, %v2505_v23  ;;  %v2528_v36 = vsub.s32 2, %v2505_v23  ;;  %v2533_v38 = vsub.s32 3, %v2505_v23  ;;  %s2396_s15 = scalar_lea.vmem %s2071_s3, 256  ;;  %p2401_p1 = scmp.lt.s32.totalorder %s2071_s3, %s2071_s3 }
   0xa   :  { %2185 = vmatprep.subr.bf16.mxu1 %v2420_v3  ;;  %v2538_v40 = vsub.s32 4, %v2505_v23  ;;  %v2543_v42 = vsub.s32 5, %v2505_v23  ;;  %v2548_v44 = vsub.s32 6, %v2505_v23  ;;  %v2553_v46 = vsub.s32 7, %v2505_v23  ;;  %p2397_p0 = scmp.ne.s32.totalorder %s2071_s3, %s2396_s15  ;;  %p2402_p2 = scmp.lt.s32.totalorder %s2396_s15, %s2396_s15 }
   0xb   :  { %2121 = vmatmul.mubr.msk.f32.vlgmr.msra.gmra.mrb[0].mxu0 %vm25_vm1, %v18_v14  ;;  %vm1144_vm12 = vcmask 1047559  }
   0xc   :  { %2132 = vmatmul.mubr.msk.f32.vlgmr.msra.gmra.mrb[0].mxu1 %vm25_vm1, %v18_v14  ;;  %2142 = vmatprep.mubr.msk.f32.mxu0 %vm2421_vm0, %v2422_v11  ;;  %p2403_p3 = por %p2402_p2, %p2401_p1 }
   0xd   :  { %2187 = vmatpush3.bf16.msra.mxu1 %v2174_v8  ;;  %2153 = vmatprep.mubr.msk.f32.mxu1 %vm2421_vm0, %v2422_v11 }
   0xe   :  { %2188 = vmatprep.subr.bf16.mxu1 %v2420_v3  ;;  %2181 = vmatpush3.bf16.msra.mxu0 %v2180_v18  ;;  %p2404_p4 = pnand %p2403_p3, %p2397_p0 }
   0xf   :  { %2182 = vmatprep.subr.bf16.mxu0 %v2420_v3 }
  0x11   :  { %2190 = vmatpush3.bf16.msra.mxu1 %v2177_v13 }
  0x12   :  { %2184 = vmatpush3.bf16.msra.mxu0 %v2183_v21 }
  0x13   :  { %2191 = vmatprep.subr.bf16.mxu0 %v2420_v3 }
  0x14   :  { %2154 = vmatmul.mubr.msk.f32.vlgmr.msra.gmra.mrb[2].mxu1 %vm25_vm1, %v2081_v15 }
  0x15   :  { %2143 = vmatmul.mubr.msk.f32.vlgmr.msra.gmra.mrb[2].mxu0 %vm25_vm1, %v18_v14 }
  0x16   :  { %2193 = vmatpush3.bf16.msra.mxu0 %v2180_v18  ;;  %2164 = vmatprep.mubr.msk.f32.mxu0 %vm2421_vm0, %v2422_v11 }
  0x17   :  { %2194 = vmatprep.subr.bf16.mxu0 %v2420_v3 }
  0x1a   :  { %2196 = vmatpush3.bf16.msra.mxu0 %v2183_v21 }
  0x1d   :  { %2165 = vmatmul.mubr.msk.f32.vlgmr.msra.gmra.mrb[4].mxu0 %vm25_vm1, %v2081_v15 }
  0xde   :  { %v2510_v25 = vpop.f32.mrb[0].mxu0 }
  0xdf   :  { %v2512_v26 = vpop.f32.mrb[0].mxu1  ;;  %v2122_v27 = vpop.f32.mrb[1].mxu0  ;;  %v261_v28 = vrot.slane %v2510_v25, %v2508_v24  ;;  %v276_v33 = vrot.slane %v2510_v25, %v2521_v32  ;;  %v291_v37 = vrot.slane %v2510_v25, %v2528_v36  ;;  %v306_v39 = vrot.slane %v2510_v25, %v2533_v38 }
  0xe0   :  { %v249_v29 = vsel %vm248_vm2, %v2512_v26, -inf  ;;  %v2133_v30 = vpop.f32.mrb[1].mxu1  ;;  %v252_v31 = vsel %vm248_vm2, %v2512_v26, inf  ;;  %v321_v41 = vrot.slane %v2510_v25, %v2538_v40  ;;  %v336_v43 = vrot.slane %v2510_v25, %v2543_v42 }
  0xe1   :  { %250 = vmax.xlane.f32.xlu0 %v249_v29  ;;  %263 = vbcast.lane.b32.xlu1 %v261_v28, 256  ;;  %v351_v45 = vrot.slane %v2510_v25, %v2548_v44  ;;  %v366_v47 = vrot.slane %v2510_v25, %v2553_v46  ;;  %vm99_vm3 = vcmp.ge.f32.partialorder %v2510_v25, 0.0 }
  0xe5   :  { %253 = vmin.xlane.f32.xlu0 %v252_v31  ;;  %267 = vbcast.lane.b32.xlu1 %v261_v28, 264 }
  0xe7   :  { %v2525_v34 = vpop.f32.mrb[2].mxu1 }
  0xe8   :  { %v2155_v35 = vpop.f32.mrb[3].mxu1  ;;  %v1299_v48 = vsel %vm248_vm2, %v2525_v34, -inf  ;;  %v1302_v49 = vsel %vm248_vm2, %v2525_v34, inf  ;;  %v2569_v57 = vpop.f32.mrb[2].mxu0 }
  0xe9   :  { %278 = vbcast.lane.b32.xlu1 %v276_v33, 256  ;;  %v2144_v58 = vpop.f32.mrb[3].mxu0 }
  0xed   :  { %282 = vbcast.lane.b32.xlu1 %v276_v33, 264 }
  0xf1   :  { %286 = vbcast.lane.b32.xlu1 %v276_v33, 272 }
  0xf5   :  { %293 = vbcast.lane.b32.xlu1 %v291_v37, 256 }
  0xf9   :  { %297 = vbcast.lane.b32.xlu1 %v291_v37, 264 }
  0xfb   :  { %271 = vbcast.lane.b32.xlu0 %v261_v28, 272 }
  0xfd   :  { %301 = vbcast.lane.b32.xlu1 %v291_v37, 272 }
  0xff   :  { %308 = vbcast.lane.b32.xlu0 %v306_v39, 256 }
 0x101   :  { %312 = vbcast.lane.b32.xlu1 %v306_v39, 264 }
 0x103   :  { %316 = vbcast.lane.b32.xlu0 %v306_v39, 272 }
 0x105   :  { %323 = vbcast.lane.b32.xlu1 %v321_v41, 256 }
 0x107   :  { %327 = vbcast.lane.b32.xlu0 %v321_v41, 264 }
 0x109   :  { %331 = vbcast.lane.b32.xlu1 %v321_v41, 272  ;;  %v2632_v41 = vpop.f32.mrb[4].mxu0 }
 0x10b   :  { %338 = vbcast.lane.b32.xlu0 %v336_v43, 256 }
 0x10d   :  { %342 = vbcast.lane.b32.xlu1 %v336_v43, 264 }
 0x10f   :  { %346 = vbcast.lane.b32.xlu0 %v336_v43, 272  ;;  %v2166_v43 = vpop.f32.mrb[5].mxu0 }
 0x111   :  { %353 = vbcast.lane.b32.xlu1 %v351_v45, 256 }
 0x113   :  { %357 = vbcast.lane.b32.xlu0 %v351_v45, 264 }
 0x115   :  { %361 = vbcast.lane.b32.xlu1 %v351_v45, 272 }
 0x117   :  { %368 = vbcast.lane.b32.xlu0 %v366_v47, 256 }
 0x119   :  { %372 = vbcast.lane.b32.xlu1 %v366_v47, 264 }
 0x11b   :  { %376 = vbcast.lane.b32.xlu0 %v366_v47, 272  ;;  %v2423_v47 = vmov 1966171168  }
 0x13a   :  { %1300 = vmax.xlane.f32.xlu0 %v1299_v48  ;;  %v381_v48 = vunpack.c.l.s4 %v2423_v47  ;;  %v379_v47 = vcombine.high %v2512_v26, %v2512_v26 }
 0x13d   :  { %1303 = vmin.xlane.f32.xlu1 %v1302_v49  ;;  %v382_v49 = vunpack.c.0.s8 %v381_v48 }
 0x153   :  { %v2561_v51 = vpop.permute.xlu1 %263 }
 0x157   :  { %v2571_v59 = vpop.permute.xlu1 %267 }
 0x15b   :  { %v2574_v61 = vpop.permute.xlu1 %278 }
 0x15f   :  { %v2577_v63 = vpop.permute.xlu1 %282 }
 0x163   :  { %v2580_v1 = vpop.permute.xlu1 %286 }
 0x167   :  { %v2583_v3 = vpop.permute.xlu1 %293 }
 0x16b   :  { %v2588_v6 = vpop.permute.xlu1 %297 }
 0x16e   :  { %v251_v50 = vpop.xlane.xlu0 %250 }
 0x16f   :  { %v255_v53 = vmul.f32 %v251_v50, %v2510_v25  ;;  %v2593_v9 = vpop.permute.xlu1 %301  ;;  %v2639_v50 = vsub.s32 %v382_v49, %v2505_v23 }
 0x171   :  { %v692_v43 = vrot.slane %v2569_v57, %v2639_v50 }
 0x172   :  { %v254_v52 = vpop.xlane.xlu0 %253 }
 0x173   :  { %v256_v54 = vmul.f32 %v254_v52, %v2510_v25  ;;  %v2598_v12 = vpop.permute.xlu1 %312 }
 0x175   :  { %v257_v55 = vsel %vm99_vm3, %v255_v53, %v256_v54 }
 0x176   :  { %v495_v56 = vrot.slane %v257_v55, %v2508_v24  ;;  %v510_v60 = vrot.slane %v257_v55, %v2521_v32  ;;  %v525_v62 = vrot.slane %v257_v55, %v2528_v36  ;;  %v540_v0 = vrot.slane %v257_v55, %v2533_v38  ;;  %v2586_v5 = vpop.permute.xlu0 %271 }
 0x177   :  { %v555_v2 = vrot.slane %v257_v55, %v2538_v40  ;;  %v570_v4 = vrot.slane %v257_v55, %v2543_v42  ;;  %v585_v8 = vrot.slane %v257_v55, %v2548_v44  ;;  %v600_v10 = vrot.slane %v257_v55, %v2553_v46  ;;  %v2602_v14 = vpop.permute.xlu1 %323 }
 0x178   :  { %501 = vbcast.lane.b32.xlu0 %v495_v56, 264  ;;  %497 = vbcast.lane.b32.xlu1 %v495_v56, 256 }
 0x17a   :  { %v2590_v7 = vpop.permute.xlu0 %308 }
 0x17b   :  { %v2606_v16 = vpop.permute.xlu1 %331 }
 0x17c   :  { %512 = vbcast.lane.b32.xlu0 %v510_v60, 256  ;;  %505 = vbcast.lane.b32.xlu1 %v495_v56, 272  ;;  %3462 = vst [vmem:[#allocation8_spill] sm:$0xff] %v2606_v16 }
 0x17e   :  { %v2596_v11 = vpop.permute.xlu0 %316 }
 0x17f   :  { %v2610_v18 = vpop.permute.xlu1 %342 }
 0x180   :  { %520 = vbcast.lane.b32.xlu0 %v510_v60, 272  ;;  %516 = vbcast.lane.b32.xlu1 %v510_v60, 264  ;;  %3464 = vst [vmem:[#allocation10_spill] sm:$0xff] %v2610_v18 }
 0x182   :  { %v2600_v13 = vpop.permute.xlu0 %327 }
 0x183   :  { %3460 = vst [vmem:[#allocation6_spill] sm:$0xff] %v2600_v13  ;;  %v2614_v20 = vpop.permute.xlu1 %353 }
 0x184   :  { %531 = vbcast.lane.b32.xlu0 %v525_v62, 264  ;;  %527 = vbcast.lane.b32.xlu1 %v525_v62, 256  ;;  %3466 = vst [vmem:[#allocation12_spill] sm:$0xff] %v2614_v20 }
 0x186   :  { %v2604_v15 = vpop.permute.xlu0 %338 }
 0x187   :  { %3461 = vst [vmem:[#allocation7_spill] sm:$0xff] %v2604_v15  ;;  %v2618_v27 = vpop.permute.xlu1 %361 }
 0x188   :  { %542 = vbcast.lane.b32.xlu0 %v540_v0, 256  ;;  %535 = vbcast.lane.b32.xlu1 %v525_v62, 272  ;;  %3468 = vst [vmem:[#allocation14_spill] sm:$0xff] %v2618_v27 }
 0x18a   :  { %v2608_v17 = vpop.permute.xlu0 %346 }
 0x18b   :  { %3463 = vst [vmem:[#allocation9_spill] sm:$0xff] %v2608_v17  ;;  %v2622_v29 = vpop.permute.xlu1 %372 }
 0x18c   :  { %550 = vbcast.lane.b32.xlu0 %v540_v0, 272  ;;  %546 = vbcast.lane.b32.xlu1 %v540_v0, 264  ;;  %3470 = vst [vmem:[#allocation16_spill] sm:$0xff] %v2622_v29 }
 0x18e   :  { %v2612_v19 = vpop.permute.xlu0 %357 }
 0x18f   :  { %3465 = vst [vmem:[#allocation11_spill] sm:$0xff] %v2612_v19 }
 0x190   :  { %561 = vbcast.lane.b32.xlu0 %v555_v2, 264  ;;  %557 = vbcast.lane.b32.xlu1 %v555_v2, 256 }
 0x192   :  { %v2616_v21 = vpop.permute.xlu0 %368 }
 0x193   :  { %3467 = vst [vmem:[#allocation13_spill] sm:$0xff] %v2616_v21 }
 0x194   :  { %572 = vbcast.lane.b32.xlu0 %v570_v4, 256  ;;  %565 = vbcast.lane.b32.xlu1 %v555_v2, 272 }
 0x196   :  { %v2620_v28 = vpop.permute.xlu0 %376 }
 0x197   :  { %3469 = vst [vmem:[#allocation15_spill] sm:$0xff] %v2620_v28 }
 0x198   :  { %580 = vbcast.lane.b32.xlu0 %v570_v4, 272  ;;  %576 = vbcast.lane.b32.xlu1 %v570_v4, 264 }
 0x19c   :  { %591 = vbcast.lane.b32.xlu0 %v585_v8, 264  ;;  %587 = vbcast.lane.b32.xlu1 %v585_v8, 256 }
 0x1a0   :  { %602 = vbcast.lane.b32.xlu0 %v600_v10, 256  ;;  %595 = vbcast.lane.b32.xlu1 %v585_v8, 272 }
 0x1a4   :  { %610 = vbcast.lane.b32.xlu0 %v600_v10, 272  ;;  %606 = vbcast.lane.b32.xlu1 %v600_v10, 264 }
 0x1c7   :  { %v1301_v30 = vpop.xlane.xlu0 %1300 }
 0x1c8   :  { %v1305_v33 = vmul.f32 %v1301_v30, %v2510_v25 }
 0x1ca   :  { %v1304_v31 = vpop.xlane.xlu1 %1303 }
 0x1cb   :  { %v1306_v35 = vmul.f32 %v1304_v31, %v2510_v25 }
 0x1cd   :  { %v2628_v37 = vsel %vm99_vm3, %v1305_v33, %v1306_v35 }
 0x1ce   :  { %v1425_v39 = vrot.slane %v2628_v37, %v2508_v24  ;;  %v1440_v45 = vrot.slane %v2628_v37, %v2521_v32  ;;  %v1455_v25 = vrot.slane %v2628_v37, %v2528_v36  ;;  %v1470_v52 = vrot.slane %v2628_v37, %v2533_v38 }
 0x1cf   :  { %v386_v32 = vrot.slane %v2512_v26, %v2639_v50  ;;  %v1485_v36 = vrot.slane %v2628_v37, %v2538_v40  ;;  %v1500_v0 = vrot.slane %v2628_v37, %v2543_v42  ;;  %v1515_v26 = vrot.slane %v2628_v37, %v2548_v44 }
 0x1d0   :  { %1427 = vbcast.lane.b32.xlu0 %v1425_v39, 256  ;;  %1431 = vbcast.lane.b32.xlu1 %v1425_v39, 264 }
 0x1d1   :  { %v394_v53 = vcombine.high %v386_v32, %v386_v32  ;;  %v402_v54 = vrot.slane %v386_v32, %v2639_v50 }
 0x1d3   :  { %v416_v55 = vrot.slane %v394_v53, %v2639_v50  ;;  %v431_v56 = vrot.slane %v402_v54, %v2508_v24  ;;  %v424_v33 = vcombine.high %v402_v54, %v402_v54 }
 0x1d4   :  { %1446 = vbcast.lane.b32.xlu0 %v1440_v45, 264  ;;  %1442 = vbcast.lane.b32.xlu1 %v1440_v45, 256 }
 0x1d5   :  { %v468_v38 = vmul.f32 %v431_v56, %v2561_v51  ;;  %v469_v58 = vmul.f32 %v431_v56, %v2571_v59  ;;  %v435_v2 = vrot.slane %v416_v55, %v2508_v24  ;;  %v470_v10 = vmul.f32 %v431_v56, %v2586_v5 }
 0x1d6   :  { %v439_v32 = vrot.slane %v424_v33, %v2508_v24  ;;  %v2665_v56 = vrot.slane %v692_v43, %v2639_v50 }
 0x1d7   :  { %v471_v40 = vmul.f32 %v435_v2, %v2574_v61  ;;  %v472_v48 = vmul.f32 %v435_v2, %v2577_v63  ;;  %v473_v49 = vmul.f32 %v435_v2, %v2580_v1 }
 0x1d8   :  { %1450 = vbcast.lane.b32.xlu0 %v1440_v45, 272  ;;  %1435 = vbcast.lane.b32.xlu1 %v1425_v39, 272  ;;  %v737_v44 = vrot.slane %v2665_v56, %v2508_v24 }
 0x1dc   :  { %1461 = vbcast.lane.b32.xlu0 %v1455_v25, 264  ;;  %1457 = vbcast.lane.b32.xlu1 %v1455_v25, 256 }
 0x1e0   :  { %1472 = vbcast.lane.b32.xlu0 %v1470_v52, 256  ;;  %1465 = vbcast.lane.b32.xlu1 %v1455_v25, 272 }
 0x1e4   :  { %1480 = vbcast.lane.b32.xlu0 %v1470_v52, 272  ;;  %1476 = vbcast.lane.b32.xlu1 %v1470_v52, 264 }
 0x1e8   :  { %1491 = vbcast.lane.b32.xlu0 %v1485_v36, 264  ;;  %1487 = vbcast.lane.b32.xlu1 %v1485_v36, 256 }
 0x1ea   :  { %v502_v60 = vpop.permute.xlu0 %501  ;;  %v498_v62 = vpop.permute.xlu1 %497 }
 0x1eb   :  { %v613_v4 = vsub.f32 %v469_v58, %v502_v60  ;;  %v612_v8 = vsub.f32 %v468_v38, %v498_v62  ;;  %v426_v38 = vcombine.high %v416_v55, %v416_v55  ;;  %v474_v62 = vmul.f32 %v439_v32, %v2583_v3 }
 0x1ec   :  { %1502 = vbcast.lane.b32.xlu0 %v1500_v0, 256  ;;  %1495 = vbcast.lane.b32.xlu1 %v1485_v36, 272  ;;  %v700_v36 = vcombine.high %v692_v43, %v692_v43  ;;  %v476_v43 = vmul.f32 %v439_v32, %v2593_v9 }
 0x1ed   :  { %v638_v30 = vmul.f32 1.442695, %v613_v4  ;;  %v636_v31 = vmul.f32 1.442695, %v612_v8  ;;  %v393_v8 = vrot.slane %v379_v47, %v2639_v50 }
 0x1ee   :  { %v513_v35 = vpop.permute.xlu0 %512  ;;  %v506_v39 = vpop.permute.xlu1 %505 }
 0x1ef   :  { %2204 = vpow2.f32 %v638_v30  ;;  %v615_v42 = vsub.f32 %v471_v40, %v513_v35  ;;  %v614_v45 = vsub.f32 %v470_v10, %v506_v39  ;;  %v2673_v40 = vrot.slane %v700_v36, %v2639_v50 }
 0x1f0   :  { %2206 = vpow2.f32 %v636_v31  ;;  %1510 = vbcast.lane.b32.xlu0 %v1500_v0, 272  ;;  %1506 = vbcast.lane.b32.xlu1 %v1500_v0, 264  ;;  %v475_v0 = vmul.f32 %v439_v32, %v2588_v6  ;;  %v1530_v30 = vrot.slane %v2628_v37, %v2553_v46  ;;  %v443_v31 = vrot.slane %v426_v38, %v2508_v24 }
 0x1f1   :  { %v642_v25 = vmul.f32 1.442695, %v615_v42  ;;  %v640_v52 = vmul.f32 1.442695, %v614_v45  ;;  %v2687_v46 = vrot.slane %v393_v8, %v2639_v50  ;;  %v741_v37 = vrot.slane %v2673_v40, %v2508_v24 }
 0x1f2   :  { %v521_v53 = vpop.permute.xlu0 %520  ;;  %v517_v54 = vpop.permute.xlu1 %516  ;;  %v477_v42 = vmul.f32 %v443_v31, %v2590_v7  ;;  %v478_v38 = vmul.f32 %v443_v31, %v2598_v12 }
 0x1f3   :  { %2208 = vpow2.f32 %v642_v25  ;;  %v617_v58 = vsub.f32 %v473_v49, %v521_v53  ;;  %v616_v60 = vsub.f32 %v472_v48, %v517_v54  ;;  %v395_v53 = vcombine.high %v393_v8, %v393_v8 }
 0x1f4   :  { %2210 = vpow2.f32 %v640_v52  ;;  %1521 = vbcast.lane.b32.xlu0 %v1515_v26, 264  ;;  %1517 = vbcast.lane.b32.xlu1 %v1515_v26, 256  ;;  %v425_v22 = vcombine.high %v2687_v46, %v2687_v46 }
 0x1f5   :  { %v646_v2 = vmul.f32 1.442695, %v617_v58  ;;  %v644_v4 = vmul.f32 1.442695, %v616_v60  ;;  %v479_v58 = vmul.f32 %v443_v31, %v2596_v11 }
 0x1f6   :  { %v532_v55 = vpop.permute.xlu0 %531  ;;  %v528_v10 = vpop.permute.xlu1 %527 }
 0x1f7   :  { %2212 = vpow2.f32 %v646_v2  ;;  %v619_v33 = vsub.f32 %v475_v0, %v532_v55  ;;  %v618_v35 = vsub.f32 %v474_v62, %v528_v10  ;;  %v447_v2 = vrot.slane %v2687_v46, %v2508_v24 }
 0x1f8   :  { %2214 = vpow2.f32 %v644_v4  ;;  %1532 = vbcast.lane.b32.xlu0 %v1530_v30, 256  ;;  %1525 = vbcast.lane.b32.xlu1 %v1515_v26, 272  ;;  %v730_v4 = vcombine.high %v2665_v56, %v2665_v56 }
 0x1f9   :  { %v2680_v39 = vpop.eup %2204  ;;  %v650_v45 = vmul.f32 1.442695, %v619_v33  ;;  %v648_v47 = vmul.f32 1.442695, %v618_v35  ;;  %v481_v56 = vmul.f32 %v447_v2, %v2600_v13 }
 0x1fa   :  { %v2684_v48 = vpop.eup %2206  ;;  %v543_v49 = vpop.permute.xlu0 %542  ;;  %v2692_v52 = vmul.f32 %v2680_v39, %v737_v44 }
 0x1fb   :  { %v536_v25 = vpop.permute.xlu1 %535  ;;  %2216 = vpow2.f32 %v650_v45  ;;  %v621_v32 = vsub.f32 %v477_v42, %v543_v49  ;;  %v2695_v36 = vmul.f32 %v2684_v48, %v737_v44  ;;  %v480_v42 = vmul.f32 %v447_v2, %v2602_v14 }
 0x1fc   :  { %v620_v54 = vsub.f32 %v476_v43, %v536_v25  ;;  %2218 = vpow2.f32 %v648_v47  ;;  %1540 = vbcast.lane.b32.xlu0 %v1530_v30, 272  ;;  %1536 = vbcast.lane.b32.xlu1 %v1530_v30, 264  ;;  %v2711_v30 = vrot.slane %v395_v53, %v2639_v50  ;;  %v685_v25 = vcombine.high %v2569_v57, %v2569_v57 }
 0x1fd   :  { %v2697_v26 = vpop.eup %2208  ;;  %v654_v60 = vmul.f32 1.442695, %v621_v32  ;;  %v732_v53 = vcombine.high %v2673_v40, %v2673_v40  ;;  %v745_v32 = vrot.slane %v730_v4, %v2508_v24  ;;  %v482_v40 = vmul.f32 %v447_v2, %v2606_v16 }
 0x1fe   :  { %v652_v62 = vmul.f32 1.442695, %v620_v54  ;;  %v2701_v0 = vpop.eup %2210  ;;  %v551_v8 = vpop.permute.xlu0 %550  ;;  %v2708_v10 = vmul.f32 %v2697_v26, %v741_v37  ;;  %v455_v16 = vrot.slane %v425_v22, %v2508_v24 }
 0x1ff   :  { %v547_v55 = vpop.permute.xlu1 %546  ;;  %2220 = vpow2.f32 %v654_v60  ;;  %v623_v31 = vsub.f32 %v479_v58, %v551_v8  ;;  %v2714_v35 = vmul.f32 %v2701_v0, %v737_v44  ;;  %v451_v58 = vrot.slane %v2711_v30, %v2508_v24 }
 0x200   :  { %v622_v33 = vsub.f32 %v478_v38, %v547_v55  ;;  %2222 = vpow2.f32 %v652_v62 }
 0x201   :  { %v2716_v43 = vpop.eup %2212  ;;  %v658_v45 = vmul.f32 1.442695, %v623_v31  ;;  %v483_v4 = vmul.f32 %v451_v58, %v2604_v15  ;;  %v484_v46 = vmul.f32 %v451_v58, %v2610_v18 }
 0x202   :  { %v656_v47 = vmul.f32 1.442695, %v622_v33  ;;  %v2720_v49 = vpop.eup %2214  ;;  %v562_v44 = vpop.permute.xlu0 %561  ;;  %v2728_v38 = vmul.f32 %v2716_v43, %v741_v37 }
 0x203   :  { %v558_v54 = vpop.permute.xlu1 %557  ;;  %2224 = vpow2.f32 %v658_v45  ;;  %v625_v60 = vsub.f32 %v481_v56, %v562_v44  ;;  %v2733_v8 = vmul.f32 %v2720_v49, %v741_v37  ;;  %v699_v56 = vrot.slane %v685_v25, %v2639_v50 }
 0x204   :  { %v624_v62 = vsub.f32 %v480_v42, %v558_v54  ;;  %2226 = vpow2.f32 %v656_v47  ;;  %v749_v47 = vrot.slane %v732_v53, %v2508_v24  ;;  %v485_v25 = vmul.f32 %v451_v58, %v2608_v17 }
 0x205   :  { %v2735_v57 = vpop.eup %2216  ;;  %v662_v55 = vmul.f32 1.442695, %v625_v60  ;;  %v701_v53 = vcombine.high %v699_v56, %v699_v56 }
 0x206   :  { %v660_v31 = vmul.f32 1.442695, %v624_v62  ;;  %v2739_v33 = vpop.eup %2218  ;;  %v573_v42 = vpop.permute.xlu0 %572  ;;  %v2745_v37 = vmul.f32 %v2735_v57, %v745_v32 }
 0x207   :  { %v566_v45 = vpop.permute.xlu1 %565  ;;  %2228 = vpow2.f32 %v662_v55  ;;  %v627_v2 = vsub.f32 %v483_v4, %v573_v42  ;;  %v2749_v54 = vmul.f32 %v2739_v33, %v745_v32  ;;  %v2759_v4 = vrot.slane %v699_v56, %v2639_v50 }
 0x208   :  { %3471 = vst [vmem:[#allocation17_spill] sm:$0xff] %v2745_v37  ;;  %v626_v44 = vsub.f32 %v482_v40, %v566_v45  ;;  %2230 = vpow2.f32 %v660_v31  ;;  %v427_v42 = vcombine.high %v2711_v30, %v2711_v30  ;;  %v486_v56 = vmul.f32 %v455_v16, %v2614_v20 }
 0x209   :  { %v2751_v60 = vpop.eup %2220  ;;  %v666_v62 = vmul.f32 1.442695, %v627_v2  ;;  %v753_v30 = vrot.slane %v2759_v4, %v2508_v24 }
 0x20a   :  { %v664_v23 = vmul.f32 1.442695, %v626_v44  ;;  %v2755_v15 = vpop.eup %2222  ;;  %v581_v40 = vpop.permute.xlu0 %580  ;;  %v2762_v31 = vmul.f32 %v2751_v60, %v749_v47  ;;  %v487_v44 = vmul.f32 %v455_v16, %v2612_v19 }
 0x20b   :  { %v577_v55 = vpop.permute.xlu1 %576  ;;  %2232 = vpow2.f32 %v666_v62  ;;  %v629_v58 = vsub.f32 %v485_v25, %v581_v40  ;;  %v2767_v2 = vmul.f32 %v2755_v15, %v745_v32  ;;  %v459_v25 = vrot.slane %v427_v42, %v2508_v24 }
 0x20c   :  { %3472 = vst [vmem:[#allocation18_spill] sm:$0xff] %v2762_v31  ;;  %v628_v45 = vsub.f32 %v484_v46, %v577_v55  ;;  %2234 = vpow2.f32 %v664_v23  ;;  %v729_v31 = vrot.slane %v701_v53, %v2639_v50  ;;  %v488_v53 = vmul.f32 %v455_v16, %v2618_v27 }
 0x20d   :  { %3473 = vst [vmem:[#allocation19_spill] sm:$0xff] %v2767_v2  ;;  %v2769_v22 = vpop.eup %2224  ;;  %v670_v17 = vmul.f32 1.442695, %v629_v58 }
 0x20e   :  { %v668_v18 = vmul.f32 1.442695, %v628_v45  ;;  %v2773_v37 = vpop.eup %2226  ;;  %v592_v46 = vpop.permute.xlu0 %591  ;;  %v2779_v32 = vmul.f32 %v2769_v22, %v749_v47  ;;  %v489_v45 = vmul.f32 %v459_v25, %v2616_v21  ;;  %v731_v21 = vcombine.high %v2759_v4, %v2759_v4 }
 0x20f   :  { %v588_v23 = vpop.permute.xlu1 %587  ;;  %2236 = vpow2.f32 %v670_v17  ;;  %v631_v62 = vsub.f32 %v487_v44, %v592_v46  ;;  %v2783_v55 = vmul.f32 %v2773_v37, %v749_v47  ;;  %v490_v44 = vmul.f32 %v459_v25, %v2622_v29 }
 0x210   :  { %3474 = vst [vmem:[#allocation20_spill] sm:$0xff] %v2779_v32  ;;  %v630_v40 = vsub.f32 %v486_v56, %v588_v23  ;;  %2238 = vpow2.f32 %v668_v18  ;;  %v757_v18 = vrot.slane %v729_v31, %v2508_v24  ;;  %v491_v46 = vmul.f32 %v459_v25, %v2620_v28 }
 0x211   :  { %v2785_v58 = vpop.eup %2228  ;;  %v674_v19 = vmul.f32 1.442695, %v631_v62  ;;  %v733_v29 = vcombine.high %v729_v31, %v729_v31  ;;  %v870_v4 = vsel %vm248_vm2, %v2684_v48, 0.0  ;;  %v761_v28 = vrot.slane %v731_v21, %v2508_v24 }
 0x212   :  { %v672_v20 = vmul.f32 1.442695, %v630_v40  ;;  %v2789_v2 = vpop.eup %2230  ;;  %v603_v32 = vpop.permute.xlu0 %602  ;;  %v2792_v17 = vmul.f32 %v2785_v58, %v753_v30  ;;  %v873_v21 = vsel %vm248_vm2, %v2680_v39, 0.0 }
 0x213   :  { %v596_v13 = vpop.permute.xlu1 %595  ;;  %2240 = vpow2.f32 %v674_v19  ;;  %v633_v47 = vsub.f32 %v489_v45, %v603_v32  ;;  %v2796_v56 = vmul.f32 %v2789_v2, %v753_v30  ;;  %v765_v48 = vrot.slane %v733_v29, %v2508_v24 }
 0x214   :  { %3475 = vst [vmem:[#allocation21_spill] sm:$0xff] %v2792_v17  ;;  %v632_v42 = vsub.f32 %v488_v53, %v596_v13  ;;  %2242 = vpow2.f32 %v672_v20  ;;  %v879_v29 = vsel %vm248_vm2, %v2697_v26, 0.0  ;;  %v891_v26 = vsel %vm248_vm2, %v2735_v57, 0.0 }
 0x215   :  { %v2798_v16 = vpop.eup %2232  ;;  %v678_v23 = vmul.f32 1.442695, %v633_v47  ;;  %v1316_v57 = vrot.slane %v2525_v34, %v2639_v50 }
 0x216   :  { %v676_v62 = vmul.f32 1.442695, %v632_v42  ;;  %v2235_v40 = vpop.eup %2234  ;;  %v611_v27 = vpop.permute.xlu0 %610  ;;  %v2805_v13 = vmul.f32 %v2798_v16, %v757_v18 }
 0x217   :  { %v607_v19 = vpop.permute.xlu1 %606  ;;  %2244 = vpow2.f32 %v678_v23  ;;  %v635_v20 = vsub.f32 %v491_v46, %v611_v27  ;;  %v2807_v53 = vmul.f32 %v2235_v40, %v753_v30  ;;  %v876_v46 = vsel %vm248_vm2, %v2701_v0, 0.0 }
 0x218   :  { %v634_v32 = vsub.f32 %v490_v44, %v607_v19  ;;  %2246 = vpow2.f32 %v676_v62  ;;  %v882_v19 = vsel %vm248_vm2, %v2720_v49, 0.0  ;;  %v885_v49 = vsel %vm248_vm2, %v2716_v43, 0.0 }
 0x219   :  { %v2809_v45 = vpop.eup %2236  ;;  %v682_v25 = vmul.f32 1.442695, %v635_v20  ;;  %v906_v43 = vsel %vm248_vm2, %v2789_v2, 0.0  ;;  %v1332_v2 = vrot.slane %v1316_v57, %v2639_v50 }
 0x21a   :  { %v680_v47 = vmul.f32 1.442695, %v634_v32  ;;  %v2239_v42 = vpop.eup %2238  ;;  %v2815_v17 = vmul.f32 %v2809_v45, %v757_v18 }
 0x21b   :  { %2248 = vpow2.f32 %v682_v25  ;;  %871 = vadd.xlane.f32.xlu0 %v870_v4  ;;  %v2817_v27 = vmul.f32 %v2239_v42, %v757_v18  ;;  %v888_v25 = vsel %vm248_vm2, %v2739_v33, 0.0  ;;  %v900_v33 = vsel %vm248_vm2, %v2773_v37, 0.0 }
 0x21c   :  { %2250 = vpow2.f32 %v680_v47  ;;  %v909_v37 = vsel %vm248_vm2, %v2785_v58, 0.0  ;;  %v921_v58 = vsel %vm248_vm2, %v2809_v45, 0.0 }
 0x21d   :  { %v2819_v30 = vpop.eup %2240 }
 0x21e   :  { %v2243_v44 = vpop.eup %2242  ;;  %v2824_v31 = vmul.f32 %v2819_v30, %v761_v28 }
 0x21f   :  { %877 = vadd.xlane.f32.xlu0 %v876_v46  ;;  %v2829_v23 = vmul.f32 %v2243_v44, %v761_v28  ;;  %v897_v46 = vsel %vm248_vm2, %v2751_v60, 0.0  ;;  %v918_v60 = vsel %vm248_vm2, %v2239_v42, 0.0 }
 0x220   :  { %874 = vadd.xlane.f32.xlu1 %v873_v21  ;;  %v1324_v21 = vcombine.high %v1316_v57, %v1316_v57 }
 0x221   :  { %v2831_v18 = vpop.eup %2244 }
 0x222   :  { %v2247_v62 = vpop.eup %2246  ;;  %v2836_v0 = vmul.f32 %v2831_v18, %v765_v48 }
 0x223   :  { %883 = vadd.xlane.f32.xlu0 %v882_v19  ;;  %v2840_v20 = vmul.f32 %v2247_v62, %v761_v28  ;;  %v894_v28 = vsel %vm248_vm2, %v2755_v15, 0.0  ;;  %v903_v15 = vsel %vm248_vm2, %v2769_v22, 0.0  ;;  %v915_v22 = vsel %vm248_vm2, %v2798_v16, 0.0 }
 0x224   :  { %880 = vadd.xlane.f32.xlu1 %v879_v29  ;;  %v1346_v19 = vrot.slane %v1324_v21, %v2639_v50  ;;  %v1361_v29 = vrot.slane %v1332_v2, %v2508_v24  ;;  %v930_v16 = vsel %vm248_vm2, %v2247_v62, 0.0 }
 0x225   :  { %v2249_v39 = vpop.eup %2248 }
 0x226   :  { %v2842_v32 = vpop.eup %2250  ;;  %v2846_v47 = vmul.f32 %v2249_v39, %v765_v48  ;;  %v1398_v42 = vmul.f32 %v1361_v29, %v2561_v51  ;;  %v939_v62 = vsel %vm248_vm2, %v2249_v39, 0.0  ;;  %v1400_v39 = vmul.f32 %v1361_v29, %v2586_v5 }
 0x227   :  { %889 = vadd.xlane.f32.xlu0 %v888_v25  ;;  %v2851_v4 = vmul.f32 %v2842_v32, %v765_v48  ;;  %v912_v48 = vsel %vm248_vm2, %v2235_v40, 0.0  ;;  %v924_v40 = vsel %vm248_vm2, %v2243_v44, 0.0  ;;  %v1399_v25 = vmul.f32 %v1361_v29, %v2571_v59 }
 0x228   :  { %886 = vadd.xlane.f32.xlu1 %v885_v49 }
 0x22b   :  { %895 = vadd.xlane.f32.xlu0 %v894_v28 }
 0x22c   :  { %892 = vadd.xlane.f32.xlu1 %v891_v26  ;;  %v1365_v26 = vrot.slane %v1346_v19, %v2508_v24 }
 0x22e   :  { %v1401_v45 = vmul.f32 %v1365_v26, %v2574_v61  ;;  %v1402_v51 = vmul.f32 %v1365_v26, %v2577_v63  ;;  %v1309_v61 = vcombine.high %v2525_v34, %v2525_v34 }
 0x22f   :  { %901 = vadd.xlane.f32.xlu0 %v900_v33 }
 0x230   :  { %898 = vadd.xlane.f32.xlu1 %v897_v46  ;;  %v927_v46 = vsel %vm248_vm2, %v2819_v30, 0.0  ;;  %v933_v30 = vsel %vm248_vm2, %v2831_v18, 0.0  ;;  %v1323_v5 = vrot.slane %v1309_v61, %v2639_v50  ;;  %v810_v61 = vsel %vm248_vm2, %v2733_v8, 0.0 }
 0x233   :  { %907 = vadd.xlane.f32.xlu0 %v906_v43  ;;  %v1354_v43 = vcombine.high %v1332_v2, %v1332_v2  ;;  %v1403_v2 = vmul.f32 %v1365_v26, %v2580_v1  ;;  %v936_v1 = vsel %vm248_vm2, %v2842_v32, 0.0 }
 0x234   :  { %904 = vadd.xlane.f32.xlu1 %v903_v15 }
 0x235   :  { %v1369_v63 = vrot.slane %v1354_v43, %v2508_v24 }
 0x237   :  { %913 = vadd.xlane.f32.xlu0 %v912_v48  ;;  %v1405_v29 = vmul.f32 %v1369_v63, %v2588_v6  ;;  %v798_v6 = vsel %vm248_vm2, %v2695_v36, 0.0 }
 0x238   :  { %910 = vadd.xlane.f32.xlu1 %v909_v37  ;;  %v1622_v37 = vrot.slane %v2632_v41, %v2639_v50 }
 0x23a   :  { %v1630_v18 = vcombine.high %v1622_v37, %v1622_v37 }
 0x23b   :  { %919 = vadd.xlane.f32.xlu0 %v918_v60 }
 0x23c   :  { %916 = vadd.xlane.f32.xlu1 %v915_v22 }
 0x23f   :  { %925 = vadd.xlane.f32.xlu0 %v924_v40 }
 0x240   :  { %922 = vadd.xlane.f32.xlu1 %v921_v58  ;;  %v1356_v58 = vcombine.high %v1346_v19, %v1346_v19  ;;  %v1404_v19 = vmul.f32 %v1369_v63, %v2583_v3 }
 0x242   :  { %v1428_v49 = vpop.permute.xlu0 %1427  ;;  %v1432_v28 = vpop.permute.xlu1 %1431 }
 0x243   :  { %v1542_v44 = vsub.f32 %v1398_v42, %v1428_v49  ;;  %v1543_v33 = vsub.f32 %v1399_v25, %v1432_v28  ;;  %931 = vadd.xlane.f32.xlu0 %v930_v16  ;;  %v801_v49 = vsel %vm248_vm2, %v2692_v52, 0.0  ;;  %v2900_v28 = vrot.slane %v1622_v37, %v2639_v50 }
 0x244   :  { %928 = vadd.xlane.f32.xlu1 %v927_v46 }
 0x245   :  { %v1566_v15 = vmul.f32 1.442695, %v1542_v44  ;;  %v1568_v59 = vmul.f32 1.442695, %v1543_v33  ;;  %v1373_v44 = vrot.slane %v1356_v58, %v2508_v24  ;;  %v2909_v33 = vrot.slane %v1630_v18, %v2639_v50 }
 0x246   :  { %v1447_v48 = vpop.permute.xlu0 %1446  ;;  %v1443_v57 = vpop.permute.xlu1 %1442  ;;  %v2913_v46 = vrot.slane %v2900_v28, %v2508_v24  ;;  %v1660_v18 = vcombine.high %v2900_v28, %v2900_v28 }
 0x247   :  { %2252 = vpow2.f32 %v1566_v15  ;;  %v1546_v60 = vsub.f32 %v1402_v51, %v1447_v48  ;;  %v1545_v21 = vsub.f32 %v1401_v45, %v1443_v57  ;;  %940 = vadd.xlane.f32.xlu0 %v939_v62  ;;  %v804_v45 = vsel %vm248_vm2, %v2714_v35, 0.0 }
 0x248   :  { %2254 = vpow2.f32 %v1568_v59  ;;  %934 = vadd.xlane.f32.xlu1 %v933_v30  ;;  %v1325_v15 = vcombine.high %v1323_v5, %v1323_v5  ;;  %v1406_v48 = vmul.f32 %v1369_v63, %v2593_v9  ;;  %v1407_v57 = vmul.f32 %v1373_v44, %v2590_v7 }
 0x249   :  { %v1574_v22 = vmul.f32 1.442695, %v1546_v60  ;;  %v1572_v40 = vmul.f32 1.442695, %v1545_v21  ;;  %v2926_v35 = vrot.slane %v1323_v5, %v2639_v50  ;;  %v1671_v21 = vrot.slane %v2909_v33, %v2508_v24 }
 0x24a   :  { %v1451_v42 = vpop.permute.xlu0 %1450  ;;  %v1436_v25 = vpop.permute.xlu1 %1435  ;;  %v1409_v58 = vmul.f32 %v1373_v44, %v2596_v11 }
 0x24b   :  { %2256 = vpow2.f32 %v1574_v22  ;;  %v1547_v34 = vsub.f32 %v1403_v2, %v1451_v42  ;;  %v1544_v16 = vsub.f32 %v1400_v39, %v1436_v25  ;;  %802 = vadd.xlane.f32.xlu0 %v801_v49  ;;  %v807_v2 = vsel %vm248_vm2, %v2708_v10, 0.0 }
 0x24c   :  { %2258 = vpow2.f32 %v1572_v40  ;;  %937 = vadd.xlane.f32.xlu1 %v936_v1  ;;  %v2939_v39 = vrot.slane %v1325_v15, %v2639_v50  ;;  %v1408_v40 = vmul.f32 %v1373_v44, %v2598_v12  ;;  %v1377_v10 = vrot.slane %v2926_v35, %v2508_v24  ;;  %v3477_v15 = vld [vmem:[#allocation19_spill] sm:$0xff] }
 0x24d   :  { %v1576_v52 = vmul.f32 1.442695, %v1547_v34  ;;  %v1570_v26 = vmul.f32 1.442695, %v1544_v16  ;;  %v816_v1 = vsel %vm248_vm2, %v2749_v54, 0.0 }
 0x24e   :  { %v1462_v32 = vpop.permute.xlu0 %1461  ;;  %v1458_v43 = vpop.permute.xlu1 %1457  ;;  %v1381_v28 = vrot.slane %v2939_v39, %v2508_v24 }
 0x24f   :  { %2260 = vpow2.f32 %v1576_v52  ;;  %v1549_v3 = vsub.f32 %v1405_v29, %v1462_v32  ;;  %v1548_v51 = vsub.f32 %v1404_v19, %v1458_v43  ;;  %805 = vadd.xlane.f32.xlu0 %v804_v45  ;;  %v813_v19 = vsel %vm248_vm2, %v2728_v38, 0.0 }
 0x250   :  { %2262 = vpow2.f32 %v1570_v26  ;;  %799 = vadd.xlane.f32.xlu1 %v798_v6  ;;  %v1410_v29 = vmul.f32 %v1377_v10, %v2602_v14  ;;  %v3476_v26 = vld [vmem:[#allocation6_spill] sm:$0xff]  ;;  %v1615_v32 = vcombine.high %v2632_v41, %v2632_v41  ;;  %v1662_v14 = vcombine.high %v2909_v33, %v2909_v33 }
 0x251   :  { %v2919_v59 = vpop.eup %2252  ;;  %v1580_v62 = vmul.f32 1.442695, %v1549_v3  ;;  %v1578_v37 = vmul.f32 1.442695, %v1548_v51  ;;  %v1411_v44 = vmul.f32 %v1377_v10, %v3476_v26  ;;  %v1675_v3 = vrot.slane %v1660_v18, %v2508_v24 }
 0x252   :  { %v2923_v60 = vpop.eup %2254  ;;  %v1473_v36 = vpop.permute.xlu0 %1472  ;;  %v2934_v9 = vmul.f32 %v2919_v59, %v2913_v46  ;;  %v1355_v33 = vcombine.high %v2926_v35, %v2926_v35 }
 0x253   :  { %v1466_v30 = vpop.permute.xlu1 %1465  ;;  %2264 = vpow2.f32 %v1580_v62  ;;  %v1551_v7 = vsub.f32 %v1407_v57, %v1473_v36  ;;  %811 = vadd.xlane.f32.xlu0 %v810_v61  ;;  %v2943_v22 = vmul.f32 %v2923_v60, %v2913_v46 }
 0x254   :  { %v1550_v63 = vsub.f32 %v1406_v48, %v1466_v30  ;;  %2266 = vpow2.f32 %v1578_v37  ;;  %808 = vadd.xlane.f32.xlu1 %v807_v2  ;;  %v822_v48 = vsel %vm248_vm2, %v3477_v15, 0.0  ;;  %v3478_v37 = vld [vmem:[#allocation17_spill] sm:$0xff] }
 0x255   :  { %v2945_v8 = vpop.eup %2256  ;;  %v1584_v42 = vmul.f32 1.442695, %v1551_v7  ;;  %v819_v36 = vsel %vm248_vm2, %v3478_v37, 0.0 }
 0x256   :  { %v1582_v25 = vmul.f32 1.442695, %v1550_v63  ;;  %v2949_v49 = vpop.eup %2258  ;;  %v1481_v34 = vpop.permute.xlu0 %1480  ;;  %v2958_v5 = vmul.f32 %v2945_v8, %v1671_v21  ;;  %v3480_v63 = vld [vmem:[#allocation7_spill] sm:$0xff] }
 0x257   :  { %v1477_v16 = vpop.permute.xlu1 %1476  ;;  %2268 = vpow2.f32 %v1584_v42  ;;  %v1553_v11 = vsub.f32 %v1409_v58, %v1481_v34  ;;  %817 = vadd.xlane.f32.xlu0 %v816_v1  ;;  %v2966_v52 = vmul.f32 %v2949_v49, %v1671_v21  ;;  %v1413_v2 = vmul.f32 %v1381_v28, %v3480_v63 }
 0x258   :  { %v1552_v12 = vsub.f32 %v1408_v40, %v1477_v16  ;;  %2270 = vpow2.f32 %v1582_v25  ;;  %814 = vadd.xlane.f32.xlu1 %v813_v19  ;;  %v1629_v25 = vrot.slane %v1615_v32, %v2639_v50  ;;  %v828_v34 = vsel %vm248_vm2, %v2783_v55, 0.0 }
 0x259   :  { %v2968_v54 = vpop.eup %2260  ;;  %v1588_v43 = vmul.f32 1.442695, %v1553_v11  ;;  %v1679_v16 = vrot.slane %v1662_v14, %v2508_v24  ;;  %v3481_v11 = vld [vmem:[#allocation18_spill] sm:$0xff]  ;;  %v1385_v19 = vrot.slane %v1355_v33, %v2508_v24 }
 0x25a   :  { %v1586_v45 = vmul.f32 1.442695, %v1552_v12  ;;  %v2973_v38 = vpop.eup %2262  ;;  %v1492_v51 = vpop.permute.xlu0 %1491  ;;  %v2981_v57 = vmul.f32 %v2968_v54, %v1671_v21  ;;  %v3479_v21 = vld [vmem:[#allocation8_spill] sm:$0xff]  ;;  %v825_v12 = vsel %vm248_vm2, %v3481_v11, 0.0  ;;  %v1631_v15 = vcombine.high %v1629_v25, %v1629_v25 }
 0x25b   :  { %v1488_v6 = vpop.permute.xlu1 %1487  ;;  %2272 = vpow2.f32 %v1588_v43  ;;  %v1555_v62 = vsub.f32 %v1411_v44, %v1492_v51  ;;  %823 = vadd.xlane.f32.xlu0 %v822_v48  ;;  %v2989_v30 = vmul.f32 %v2973_v38, %v2913_v46  ;;  %v1412_v7 = vmul.f32 %v1377_v10, %v3479_v21  ;;  %v3482_v44 = vld [vmem:[#allocation10_spill] sm:$0xff]  ;;  %v3483_v43 = vld [vmem:[#allocation9_spill] sm:$0xff] }
 0x25c   :  { %v1554_v41 = vsub.f32 %v1410_v29, %v1488_v6  ;;  %2274 = vpow2.f32 %v1586_v45  ;;  %820 = vadd.xlane.f32.xlu1 %v819_v36  ;;  %v1357_v29 = vcombine.high %v2939_v39, %v2939_v39  ;;  %v1414_v32 = vmul.f32 %v1381_v28, %v3482_v44 }
 0x25d   :  { %v2991_v61 = vpop.eup %2264  ;;  %v1592_v40 = vmul.f32 1.442695, %v1555_v62  ;;  %v1415_v45 = vmul.f32 %v1381_v28, %v3483_v43  ;;  %v3019_v48 = vrot.slane %v1629_v25, %v2639_v50  ;;  %v3484_v28 = vld [vmem:[#allocation20_spill] sm:$0xff]  ;;  %v3487_v43 = vld [vmem:[#allocation21_spill] sm:$0xff] }
 0x25e   :  { %v1590_v58 = vmul.f32 1.442695, %v1554_v41  ;;  %v2995_v42 = vpop.eup %2266  ;;  %v1503_v18 = vpop.permute.xlu0 %1502  ;;  %v3001_v46 = vmul.f32 %v2991_v61, %v1675_v3  ;;  %v834_v41 = vsel %vm248_vm2, %v2796_v56, 0.0  ;;  %v831_v21 = vsel %vm248_vm2, %v3484_v28, 0.0  ;;  %v3485_v56 = vld [vmem:[#allocation12_spill] sm:$0xff] }
 0x25f   :  { %v1496_v35 = vpop.permute.xlu1 %1495  ;;  %2276 = vpow2.f32 %v1592_v40  ;;  %v1557_v10 = vsub.f32 %v1413_v2, %v1503_v18  ;;  %829 = vadd.xlane.f32.xlu0 %v828_v34  ;;  %v3010_v55 = vmul.f32 %v2995_v42, %v1675_v3  ;;  %v1416_v40 = vmul.f32 %v1385_v19, %v3485_v56 }
 0x260   :  { %v1556_v1 = vsub.f32 %v1412_v7, %v1496_v35  ;;  %2278 = vpow2.f32 %v1590_v58  ;;  %826 = vadd.xlane.f32.xlu1 %v825_v12  ;;  %v1389_v7 = vrot.slane %v1357_v29, %v2508_v24  ;;  %v3486_v58 = vld [vmem:[#allocation11_spill] sm:$0xff] }
 0x261   :  { %v3012_v26 = vpop.eup %2268  ;;  %v1596_v14 = vmul.f32 1.442695, %v1557_v10  ;;  %v1417_v25 = vmul.f32 %v1385_v19, %v3486_v58  ;;  %v3039_v10 = vrot.slane %v1631_v15, %v2639_v50  ;;  %v843_v58 = vsel %vm248_vm2, %v2805_v13, 0.0 }
 0x262   :  { %v1594_v51 = vmul.f32 1.442695, %v1556_v1  ;;  %v3016_v6 = vpop.eup %2270  ;;  %v1511_v39 = vpop.permute.xlu0 %1510  ;;  %v3024_v37 = vmul.f32 %v3012_v26, %v1679_v16  ;;  %v1683_v1 = vrot.slane %v3019_v48, %v2508_v24 }
 0x263   :  { %v1507_v62 = vpop.permute.xlu1 %1506  ;;  %2280 = vpow2.f32 %v1596_v14  ;;  %v1559_v36 = vsub.f32 %v1415_v45, %v1511_v39  ;;  %835 = vadd.xlane.f32.xlu0 %v834_v41  ;;  %v3030_v63 = vmul.f32 %v3016_v6, %v1675_v3  ;;  %v840_v3 = vsel %vm248_vm2, %v2807_v53, 0.0  ;;  %v3489_v53 = vld [vmem:[#allocation13_spill] sm:$0xff] }
 0x264   :  { %v1558_v33 = vsub.f32 %v1414_v32, %v1507_v62  ;;  %2282 = vpow2.f32 %v1594_v51  ;;  %832 = vadd.xlane.f32.xlu1 %v831_v21  ;;  %v837_v45 = vsel %vm248_vm2, %v3487_v43, 0.0  ;;  %v3488_v51 = vld [vmem:[#allocation14_spill] sm:$0xff]  ;;  %v1419_v39 = vmul.f32 %v1389_v7, %v3489_v53 }
 0x265   :  { %v3032_v2 = vpop.eup %2272  ;;  %v1600_v18 = vmul.f32 1.442695, %v1559_v36  ;;  %v1418_v15 = vmul.f32 %v1385_v19, %v3488_v51  ;;  %v846_v21 = vsel %vm248_vm2, %v2817_v27, 0.0  ;;  %v1661_v43 = vcombine.high %v3019_v48, %v3019_v48 }
 0x266   :  { %v1598_v35 = vmul.f32 1.442695, %v1558_v33  ;;  %v3036_v34 = vpop.eup %2274  ;;  %v1522_v11 = vpop.permute.xlu0 %1521  ;;  %v3046_v29 = vmul.f32 %v3032_v2, %v1679_v16  ;;  %v852_v51 = vsel %vm248_vm2, %v2829_v23, 0.0 }
 0x267   :  { %v1518_v12 = vpop.permute.xlu1 %1517  ;;  %2284 = vpow2.f32 %v1600_v18  ;;  %v1561_v44 = vsub.f32 %v1417_v25, %v1522_v11  ;;  %841 = vadd.xlane.f32.xlu0 %v840_v3  ;;  %v3051_v50 = vmul.f32 %v3036_v34, %v1679_v16  ;;  %v1687_v16 = vrot.slane %v3039_v10, %v2508_v24  ;;  %v3490_v11 = vld [vmem:[#allocation15_spill] sm:$0xff]  ;;  %v3491_v3 = vld [vmem:[#allocation16_spill] sm:$0xff] }
 0x268   :  { %v1560_v32 = vsub.f32 %v1416_v40, %v1518_v12  ;;  %2286 = vpow2.f32 %v1598_v35  ;;  %838 = vadd.xlane.f32.xlu1 %v837_v45  ;;  %v1421_v12 = vmul.f32 %v1389_v7, %v3490_v11  ;;  %v861_v11 = vsel %vm248_vm2, %v2836_v0, 0.0 }
 0x269   :  { %v3053_v14 = vpop.eup %2276  ;;  %v1604_v62 = vmul.f32 1.442695, %v1561_v44  ;;  %v1420_v44 = vmul.f32 %v1389_v7, %v3491_v3  ;;  %v849_v7 = vsel %vm248_vm2, %v2815_v17, 0.0  ;;  %v1800_v3 = vsel %vm248_vm2, %v2919_v59, 0.0 }
 0x26a   :  { %v1602_v41 = vmul.f32 1.442695, %v1560_v32  ;;  %v3057_v36 = vpop.eup %2278  ;;  %v1533_v33 = vpop.permute.xlu0 %1532  ;;  %v3062_v56 = vmul.f32 %v3053_v14, %v1683_v1  ;;  %v1809_v0 = vsel %vm248_vm2, %v2949_v49, 0.0  ;;  %v1803_v59 = vsel %vm248_vm2, %v2923_v60, 0.0 }
 0x26b   :  { %v1526_v28 = vpop.permute.xlu1 %1525  ;;  %2288 = vpow2.f32 %v1604_v62  ;;  %v1563_v40 = vsub.f32 %v1419_v39, %v1533_v33  ;;  %847 = vadd.xlane.f32.xlu0 %v846_v21  ;;  %v3069_v25 = vmul.f32 %v3057_v36, %v1683_v1  ;;  %v858_v21 = vsel %vm248_vm2, %v2840_v20, 0.0 }
 0x26c   :  { %v1562_v19 = vsub.f32 %v1418_v15, %v1526_v28  ;;  %2290 = vpow2.f32 %v1602_v41  ;;  %844 = vadd.xlane.f32.xlu1 %v843_v58  ;;  %v1663_v28 = vcombine.high %v3039_v10, %v3039_v10  ;;  %v864_v10 = vsel %vm248_vm2, %v2851_v4, 0.0 }
 0x26d   :  { %v3071_v18 = vpop.eup %2280  ;;  %v1608_v27 = vmul.f32 1.442695, %v1563_v40  ;;  %v1691_v40 = vrot.slane %v1661_v43, %v2508_v24  ;;  %v867_v4 = vsel %vm248_vm2, %v2846_v47, 0.0  ;;  %v1806_v47 = vsel %vm248_vm2, %v2973_v38, 0.0 }
 0x26e   :  { %v1606_v35 = vmul.f32 1.442695, %v1562_v19  ;;  %v3075_v32 = vpop.eup %2282  ;;  %v1541_v45 = vpop.permute.xlu0 %1540  ;;  %v3082_v15 = vmul.f32 %v3071_v18, %v1687_v16  ;;  %v1818_v49 = vsel %vm248_vm2, %v2995_v42, 0.0  ;;  %v1824_v60 = vsel %vm248_vm2, %v3016_v6, 0.0 }
 0x26f   :  { %v1537_v13 = vpop.permute.xlu1 %1536  ;;  %2292 = vpow2.f32 %v1608_v27  ;;  %v1565_v53 = vsub.f32 %v1421_v12, %v1541_v45  ;;  %853 = vadd.xlane.f32.xlu0 %v852_v51  ;;  %v3087_v62 = vmul.f32 %v3075_v32, %v1683_v1  ;;  %v855_v1 = vsel %vm248_vm2, %v2824_v31, 0.0 }
 0x270   :  { %v1564_v39 = vsub.f32 %v1420_v44, %v1537_v13  ;;  %2294 = vpow2.f32 %v1606_v35  ;;  %850 = vadd.xlane.f32.xlu1 %v849_v7  ;;  %v1695_v35 = vrot.slane %v1663_v28, %v2508_v24  ;;  %v1821_v38 = vsel %vm248_vm2, %v2991_v61, 0.0 }
 0x271   :  { %v3089_v48 = vpop.eup %2284  ;;  %v1612_v41 = vmul.f32 1.442695, %v1565_v53  ;;  %v1812_v53 = vsel %vm248_vm2, %v2945_v8, 0.0  ;;  %v1830_v8 = vsel %vm248_vm2, %v3036_v34, 0.0  ;;  %v1827_v42 = vsel %vm248_vm2, %v3012_v26, 0.0 }
 0x272   :  { %v1610_v33 = vmul.f32 1.442695, %v1564_v39  ;;  %v2287_v23 = vpop.eup %2286  ;;  %v3097_v17 = vmul.f32 %v3089_v48, %v1687_v16  ;;  %v1815_v39 = vsel %vm248_vm2, %v2968_v54, 0.0  ;;  %v1836_v54 = vsel %vm248_vm2, %v3057_v36, 0.0 }
 0x273   :  { %2296 = vpow2.f32 %v1612_v41  ;;  %859 = vadd.xlane.f32.xlu0 %v858_v21  ;;  %v3101_v19 = vmul.f32 %v2287_v23, %v1687_v16  ;;  %v1833_v6 = vsel %vm248_vm2, %v3032_v2, 0.0  ;;  %v1842_v61 = vsel %vm248_vm2, %v3075_v32, 0.0 }
 0x274   :  { %2298 = vpow2.f32 %v1610_v33  ;;  %856 = vadd.xlane.f32.xlu1 %v855_v1  ;;  %v1839_v34 = vsel %vm248_vm2, %v3053_v14, 0.0  ;;  %v1848_v7 = vsel %vm248_vm2, %v2287_v23, 0.0  ;;  %v1845_v26 = vsel %vm248_vm2, %v3071_v18, 0.0 }
 0x275   :  { %v2289_v58 = vpop.eup %2288  ;;  %v1851_v2 = vsel %vm248_vm2, %v3089_v48, 0.0  ;;  %v1728_v23 = vsel %vm248_vm2, %v2934_v9, 0.0  ;;  %v1731_v1 = vsel %vm248_vm2, %v2943_v22, 0.0  ;;  %v1740_v9 = vsel %vm248_vm2, %v2958_v5, 0.0 }
 0x276   :  { %v2291_v27 = vpop.eup %2290  ;;  %v3105_v20 = vmul.f32 %v2289_v58, %v1691_v40  ;;  %v1857_v14 = vsel %vm248_vm2, %v2289_v58, 0.0  ;;  %v1743_v22 = vsel %vm248_vm2, %v2981_v57, 0.0  ;;  %v1752_v5 = vsel %vm248_vm2, %v3030_v63, 0.0 }
 0x277   :  { %865 = vadd.xlane.f32.xlu0 %v864_v10  ;;  %v3110_v12 = vmul.f32 %v2291_v27, %v1691_v40  ;;  %v1854_v36 = vsel %vm248_vm2, %v2291_v27, 0.0  ;;  %v1734_v10 = vsel %vm248_vm2, %v2989_v30, 0.0  ;;  %v1758_v57 = vsel %vm248_vm2, %v3051_v50, 0.0 }
 0x278   :  { %862 = vadd.xlane.f32.xlu1 %v861_v11 }
 0x279   :  { %v2293_v31 = vpop.eup %2292 }
 0x27a   :  { %v2295_v16 = vpop.eup %2294  ;;  %v3114_v44 = vmul.f32 %v2293_v31, %v1695_v35  ;;  %v1863_v33 = vsel %vm248_vm2, %v2293_v31, 0.0 }
 0x27b   :  { %1801 = vadd.xlane.f32.xlu0 %v1800_v3  ;;  %v3118_v43 = vmul.f32 %v2295_v16, %v1691_v40  ;;  %v1860_v32 = vsel %vm248_vm2, %v2295_v16, 0.0  ;;  %v1737_v40 = vsel %vm248_vm2, %v2966_v52, 0.0  ;;  %v1746_v52 = vsel %vm248_vm2, %v3010_v55, 0.0 }
 0x27c   :  { %868 = vadd.xlane.f32.xlu1 %v867_v4  ;;  %v1749_v16 = vsel %vm248_vm2, %v3001_v46, 0.0  ;;  %v1755_v4 = vsel %vm248_vm2, %v3024_v37, 0.0  ;;  %v1764_v46 = vsel %vm248_vm2, %v3069_v25, 0.0  ;;  %v1770_v37 = vsel %vm248_vm2, %v3087_v62, 0.0 }
 0x27d   :  { %v2297_v24 = vpop.eup %2296 }
 0x27e   :  { %v2299_v45 = vpop.eup %2298  ;;  %v3122_v13 = vmul.f32 %v2297_v24, %v1695_v35  ;;  %v1869_v48 = vsel %vm248_vm2, %v2297_v24, 0.0 }
 0x27f   :  { %1810 = vadd.xlane.f32.xlu0 %v1809_v0  ;;  %v3126_v51 = vmul.f32 %v2299_v45, %v1695_v35  ;;  %v1866_v41 = vsel %vm248_vm2, %v2299_v45, 0.0  ;;  %v1761_v45 = vsel %vm248_vm2, %v3046_v29, 0.0  ;;  %v1776_v29 = vsel %vm248_vm2, %v3101_v19, 0.0 }
 0x280   :  { %1804 = vadd.xlane.f32.xlu1 %v1803_v59  ;;  %v1767_v59 = vsel %vm248_vm2, %v3062_v56, 0.0  ;;  %v1782_v56 = vsel %vm248_vm2, %v3110_v12, 0.0  ;;  %v1785_v12 = vsel %vm248_vm2, %v3105_v20, 0.0 }
 0x283   :  { %1807 = vadd.xlane.f32.xlu0 %v1806_v47 }
 0x284   :  { %1813 = vadd.xlane.f32.xlu1 %v1812_v53  ;;  %v1773_v53 = vsel %vm248_vm2, %v3082_v15, 0.0  ;;  %v1788_v15 = vsel %vm248_vm2, %v3118_v43, 0.0  ;;  %v1791_v43 = vsel %vm248_vm2, %v3114_v44, 0.0 }
 0x287   :  { %1819 = vadd.xlane.f32.xlu0 %v1818_v49 }
 0x288   :  { %1816 = vadd.xlane.f32.xlu1 %v1815_v39  ;;  %v1779_v39 = vsel %vm248_vm2, %v3097_v17, 0.0  ;;  %v3492_v17 = vlaneseq }
 0x28b   :  { %1825 = vadd.xlane.f32.xlu0 %v1824_v60 }
 0x28c   :  { %1822 = vadd.xlane.f32.xlu1 %v1821_v38 }
 0x28f   :  { %1831 = vadd.xlane.f32.xlu0 %v1830_v8  ;;  %v1015_v8 = vand.u32 127, %v3492_v17 }
 0x290   :  { %1828 = vadd.xlane.f32.xlu1 %v1827_v42 }
 0x293   :  { %1837 = vadd.xlane.f32.xlu0 %v1836_v54  ;;  %v1794_v54 = vsel %vm248_vm2, %v3126_v51, 0.0 }
 0x294   :  { %1834 = vadd.xlane.f32.xlu1 %v1833_v6  ;;  %v1020_v6 = vadd.s32 4294967288, %v1015_v8 }
 0x297   :  { %1843 = vadd.xlane.f32.xlu0 %v1842_v61 }
 0x298   :  { %1840 = vadd.xlane.f32.xlu1 %v1839_v34  ;;  %v1027_v34 = vadd.s32 4294967280, %v1015_v8 }
 0x29b   :  { %1849 = vadd.xlane.f32.xlu0 %v1848_v7 }
 0x29c   :  { %1846 = vadd.xlane.f32.xlu1 %v1845_v26  ;;  %v1797_v26 = vsel %vm248_vm2, %v3122_v13, 0.0 }
 0x29f   :  { %1855 = vadd.xlane.f32.xlu0 %v1854_v36 }
 0x2a0   :  { %1852 = vadd.xlane.f32.xlu1 %v1851_v2  ;;  %v3493_v2 = vld [vmem:[#allocation5_spill] sm:$0xff] }
 0x2a1   :  { %v3255_v51 = vsub.s32 %v1020_v6, %v3493_v2  ;;  %v3258_v44 = vsub.s32 %v1015_v8, %v3493_v2 }
 0x2a3   :  { %1861 = vadd.xlane.f32.xlu0 %v1860_v32 }
 0x2a4   :  { %1858 = vadd.xlane.f32.xlu1 %v1857_v14 }
 0x2a7   :  { %1867 = vadd.xlane.f32.xlu0 %v1866_v41 }
 0x2a8   :  { %v3162_v18 = vpop.xlane.xlu0 %871  ;;  %1864 = vadd.xlane.f32.xlu1 %v1863_v33  ;;  %v3262_v33 = vsub.s32 %v1027_v34, %v3493_v2 }
 0x2ab   :  { %1729 = vadd.xlane.f32.xlu0 %v1728_v23 }
 0x2ac   :  { %v878_v28 = vpop.xlane.xlu0 %877  ;;  %1870 = vadd.xlane.f32.xlu1 %v1869_v48 }
 0x2ad   :  { %v875_v21 = vpop.xlane.xlu1 %874 }
 0x2ae   :  { %2300 = vrcp.f32 %v875_v21 }
 0x2af   :  { %1738 = vadd.xlane.f32.xlu0 %v1737_v40  ;;  %2302 = vrcp.f32 %v878_v28 }
 0x2b0   :  { %v884_v58 = vpop.xlane.xlu0 %883  ;;  %1732 = vadd.xlane.f32.xlu1 %v1731_v1  ;;  %2304 = vrcp.f32 %v3162_v18 }
 0x2b1   :  { %v881_v27 = vpop.xlane.xlu1 %880  ;;  %2306 = vrcp.f32 %v884_v58 }
 0x2b2   :  { %2308 = vrcp.f32 %v881_v27 }
 0x2b3   :  { %1735 = vadd.xlane.f32.xlu0 %v1734_v10 }
 0x2b4   :  { %v3175_v35 = vpop.xlane.xlu0 %889  ;;  %1741 = vadd.xlane.f32.xlu1 %v1740_v9 }
 0x2b5   :  { %v3177_v11 = vpop.xlane.xlu1 %886 }
 0x2b6   :  { %2310 = vrcp.f32 %v3177_v11 }
 0x2b7   :  { %1747 = vadd.xlane.f32.xlu0 %v1746_v52  ;;  %2312 = vrcp.f32 %v3175_v35 }
 0x2b8   :  { %v3183_v31 = vpop.xlane.xlu0 %895  ;;  %1744 = vadd.xlane.f32.xlu1 %v1743_v22  ;;  %v2301_v7 = vpop.eup %2300 }
 0x2b9   :  { %v3185_v30 = vpop.xlane.xlu1 %892  ;;  %v2303_v36 = vpop.eup %2302  ;;  %2314 = vrcp.f32 %v3183_v31 }
 0x2ba   :  { %v2305_v41 = vpop.eup %2304  ;;  %2316 = vrcp.f32 %v3185_v30 }
 0x2bb   :  { %1753 = vadd.xlane.f32.xlu0 %v1752_v5  ;;  %v2307_v48 = vpop.eup %2306 }
 0x2bc   :  { %v3191_v3 = vpop.xlane.xlu0 %901  ;;  %1750 = vadd.xlane.f32.xlu1 %v1749_v16  ;;  %v2309_v1 = vpop.eup %2308 }
 0x2bd   :  { %v3193_v55 = vpop.xlane.xlu1 %898  ;;  %2318 = vrcp.f32 %v3191_v3 }
 0x2be   :  { %2320 = vrcp.f32 %v3193_v55 }
 0x2bf   :  { %1759 = vadd.xlane.f32.xlu0 %v1758_v57 }
 0x2c0   :  { %v3199_v24 = vpop.xlane.xlu0 %907  ;;  %1756 = vadd.xlane.f32.xlu1 %v1755_v4  ;;  %v2311_v30 = vpop.eup %2310 }
 0x2c1   :  { %v3201_v63 = vpop.xlane.xlu1 %904  ;;  %v2313_v4 = vpop.eup %2312  ;;  %2322 = vrcp.f32 %v3199_v24 }
 0x2c2   :  { %2324 = vrcp.f32 %v3201_v63 }
 0x2c3   :  { %1765 = vadd.xlane.f32.xlu0 %v1764_v46  ;;  %v2315_v46 = vpop.eup %2314 }
 0x2c4   :  { %v3207_v0 = vpop.xlane.xlu0 %913  ;;  %1762 = vadd.xlane.f32.xlu1 %v1761_v45 }
 0x2c5   :  { %v3209_v50 = vpop.xlane.xlu1 %910 }
 0x2c6   :  { %2326 = vrcp.f32 %v3209_v50 }
 0x2c7   :  { %1771 = vadd.xlane.f32.xlu0 %v1770_v37  ;;  %2328 = vrcp.f32 %v3207_v0 }
 0x2c8   :  { %v3215_v47 = vpop.xlane.xlu0 %919  ;;  %1768 = vadd.xlane.f32.xlu1 %v1767_v59 }
 0x2c9   :  { %v3217_v25 = vpop.xlane.xlu1 %916  ;;  %2330 = vrcp.f32 %v3215_v47 }
 0x2ca   :  { %2332 = vrcp.f32 %v3217_v25 }
 0x2cb   :  { %1777 = vadd.xlane.f32.xlu0 %v1776_v29  ;;  %v2317_v29 = vpop.eup %2316 }
 0x2cc   :  { %v3223_v49 = vpop.xlane.xlu0 %925  ;;  %1774 = vadd.xlane.f32.xlu1 %v1773_v53  ;;  %v2319_v63 = vpop.eup %2318 }
 0x2cd   :  { %v3225_v62 = vpop.xlane.xlu1 %922  ;;  %2334 = vrcp.f32 %v3223_v49 }
 0x2ce   :  { %2336 = vrcp.f32 %v3225_v62 }
 0x2cf   :  { %1783 = vadd.xlane.f32.xlu0 %v1782_v56 }
 0x2d0   :  { %v3231_v60 = vpop.xlane.xlu0 %931  ;;  %1780 = vadd.xlane.f32.xlu1 %v1779_v39 }
 0x2d1   :  { %v3233_v19 = vpop.xlane.xlu1 %928 }
 0x2d2   :  { %2338 = vrcp.f32 %v3233_v19 }
 0x2d3   :  { %1789 = vadd.xlane.f32.xlu0 %v1788_v15  ;;  %2340 = vrcp.f32 %v3231_v60 }
 0x2d4   :  { %v3240_v38 = vpop.xlane.xlu0 %940  ;;  %1786 = vadd.xlane.f32.xlu1 %v1785_v12 }
 0x2d5   :  { %v3243_v42 = vpop.xlane.xlu1 %934 }
 0x2d7   :  { %1795 = vadd.xlane.f32.xlu0 %v1794_v54 }
 0x2d8   :  { %v803_v61 = vpop.xlane.xlu0 %802  ;;  %1792 = vadd.xlane.f32.xlu1 %v1791_v43 }
 0x2d9   :  { %v3249_v20 = vpop.xlane.xlu1 %937  ;;  %v967_v32 = vmul.f32 %v2301_v7, %v803_v61 }
 0x2da   :  { %2342 = vrcp.f32 %v3249_v20 }
 0x2db   :  { %v1024_v28 = vrot.slane %v967_v32, %v3255_v51  ;;  %2344 = vrcp.f32 %v3243_v42 }
 0x2dc   :  { %v806_v14 = vpop.xlane.xlu0 %805  ;;  %1798 = vadd.xlane.f32.xlu1 %v1797_v26  ;;  %2346 = vrcp.f32 %v3240_v38 }
 0x2dd   :  { %v968_v18 = vmul.f32 %v2303_v36, %v806_v14  ;;  %v800_v23 = vpop.xlane.xlu1 %799  ;;  %v2321_v36 = vpop.eup %2320 }
 0x2de   :  { %v966_v13 = vmul.f32 %v2305_v41, %v800_v23  ;;  %v2323_v32 = vpop.eup %2322 }
 0x2df   :  { %v1031_v58 = vrot.slane %v968_v18, %v3262_v33  ;;  %v2325_v0 = vpop.eup %2324 }
 0x2e0   :  { %v1019_v21 = vrot.slane %v966_v13, %v3258_v44  ;;  %v812_v40 = vpop.xlane.xlu0 %811  ;;  %v2327_v47 = vpop.eup %2326 }
 0x2e1   :  { %v970_v27 = vmul.f32 %v2307_v48, %v812_v40  ;;  %v809_v10 = vpop.xlane.xlu1 %808  ;;  %v2329_v25 = vpop.eup %2328 }
 0x2e2   :  { %v1026_v9 = vsel %vm1025_vm4, %v1024_v28, %v1019_v21  ;;  %v969_v35 = vmul.f32 %v2309_v1, %v809_v10  ;;  %v2331_v41 = vpop.eup %2330 }
 0x2e3   :  { %v1033_v11 = vsel %vm1032_vm5, %v1031_v58, %v1026_v9  ;;  %v1041_v52 = vrot.slane %v970_v27, %v3255_v51  ;;  %v2333_v23 = vpop.eup %2332 }
 0x2e4   :  { %v1037_v22 = vrot.slane %v969_v35, %v3258_v44  ;;  %v818_v31 = vpop.xlane.xlu0 %817  ;;  %v2335_v19 = vpop.eup %2334 }
 0x2e5   :  { %v815_v5 = vpop.xlane.xlu1 %814  ;;  %v972_v45 = vmul.f32 %v2313_v4, %v818_v31  ;;  %v2337_v60 = vpop.eup %2336 }
 0x2e6   :  { %v1042_v16 = vsel %vm1025_vm4, %v1041_v52, %v1037_v22  ;;  %v971_v57 = vmul.f32 %v2311_v30, %v815_v5  ;;  %v2339_v40 = vpop.eup %2338 }
 0x2e7   :  { %v1051_v17 = vrot.slane %v972_v45, %v3258_v44  ;;  %v2341_v52 = vpop.eup %2340 }
 0x2e8   :  { %v1046_v37 = vrot.slane %v971_v57, %v3262_v33  ;;  %v824_v59 = vpop.xlane.xlu0 %823  ;;  %v2343_v31 = vpop.eup %2342 }
 0x2e9   :  { %v974_v53 = vmul.f32 %v2315_v46, %v824_v59  ;;  %v821_v56 = vpop.xlane.xlu1 %820  ;;  %v2345_v4 = vpop.eup %2344 }
 0x2ea   :  { %v1047_v39 = vsel %vm1032_vm5, %v1046_v37, %v1042_v16  ;;  %v973_v15 = vmul.f32 %v2317_v29, %v821_v56 }
 0x2eb   :  { %v1133_v12 = vsel %vm1132_vm6, %v1047_v39, %v1033_v11  ;;  %v1060_v43 = vrot.slane %v974_v53, %v3262_v33 }
 0x2ec   :  { %v1055_v8 = vrot.slane %v973_v15, %v3255_v51  ;;  %v830_v54 = vpop.xlane.xlu0 %829 }
 0x2ed   :  { %v827_v6 = vpop.xlane.xlu1 %826  ;;  %v976_v13 = vmul.f32 %v2319_v63, %v830_v54 }
 0x2ee   :  { %v1056_v61 = vsel %vm1025_vm4, %v1055_v8, %v1051_v17  ;;  %v975_v48 = vmul.f32 %v2321_v36, %v827_v6  ;;  %v2347_v6 = vpop.eup %2346 }
 0x2ef   :  { %v1061_v34 = vsel %vm1032_vm5, %v1060_v43, %v1056_v61  ;;  %v1069_v38 = vrot.slane %v976_v13, %v3255_v51 }
 0x2f0   :  { %v836_v7 = vpop.xlane.xlu0 %835  ;;  %v3287_v26 = vsel %vm1134_vm7, %v1061_v34, %v1133_v12  ;;  %v1065_v22 = vrot.slane %v975_v48, %v3258_v44 }
 0x2f1   :  { %v833_v3 = vpop.xlane.xlu1 %832  ;;  %v978_v62 = vmul.f32 %v2323_v32, %v836_v7 }
 0x2f2   :  { %v977_v28 = vmul.f32 %v2325_v0, %v833_v3  ;;  %v1070_v12 = vsel %vm1025_vm4, %v1069_v38, %v1065_v22 }
 0x2f3   :  { %v1079_v42 = vrot.slane %v978_v62, %v3258_v44 }
 0x2f4   :  { %v842_v55 = vpop.xlane.xlu0 %841  ;;  %v1074_v30 = vrot.slane %v977_v28, %v3262_v33 }
 0x2f5   :  { %v839_v24 = vpop.xlane.xlu1 %838  ;;  %v980_v10 = vmul.f32 %v2329_v25, %v842_v55 }
 0x2f6   :  { %v979_v49 = vmul.f32 %v2327_v47, %v839_v24  ;;  %v1075_v17 = vsel %vm1032_vm5, %v1074_v30, %v1070_v12 }
 0x2f7   :  { %v1088_v53 = vrot.slane %v980_v10, %v3262_v33  ;;  %v1137_v36 = vsel %vm1136_vm8, %v1075_v17, %v3287_v26 }
 0x2f8   :  { %v848_v2 = vpop.xlane.xlu0 %847  ;;  %v1083_v21 = vrot.slane %v979_v49, %v3255_v51 }
 0x2f9   :  { %v845_v50 = vpop.xlane.xlu1 %844  ;;  %v982_v1 = vmul.f32 %v2331_v41, %v848_v2 }
 0x2fa   :  { %v981_v58 = vmul.f32 %v2333_v23, %v845_v50  ;;  %v1084_v5 = vsel %vm1025_vm4, %v1083_v21, %v1079_v42 }
 0x2fb   :  { %v1097_v46 = vrot.slane %v982_v1, %v3255_v51  ;;  %v1089_v8 = vsel %vm1032_vm5, %v1088_v53, %v1084_v5 }
 0x2fc   :  { %v854_v14 = vpop.xlane.xlu0 %853  ;;  %v1093_v45 = vrot.slane %v981_v58, %v3258_v44  ;;  %v1139_v32 = vsel %vm1138_vm9, %v1089_v8, %v1137_v36 }
 0x2fd   :  { %v851_v18 = vpop.xlane.xlu1 %850  ;;  %v984_v9 = vmul.f32 %v2335_v19, %v854_v14 }
 0x2fe   :  { %v983_v35 = vmul.f32 %v2337_v60, %v851_v18  ;;  %v1098_v61 = vsel %vm1025_vm4, %v1097_v46, %v1093_v45 }
 0x2ff   :  { %v1107_v56 = vrot.slane %v984_v9, %v3258_v44 }
 0x300   :  { %v860_v20 = vpop.xlane.xlu0 %859  ;;  %v1102_v39 = vrot.slane %v983_v35, %v3262_v33 }
 0x301   :  { %v857_v27 = vpop.xlane.xlu1 %856  ;;  %v986_v37 = vmul.f32 %v2341_v52, %v860_v20 }
 0x302   :  { %v985_v11 = vmul.f32 %v2339_v40, %v857_v27  ;;  %v1103_v24 = vsel %vm1032_vm5, %v1102_v39, %v1098_v61 }
 0x303   :  { %v1116_v34 = vrot.slane %v986_v37, %v3262_v33  ;;  %v1141_v47 = vsel %vm1140_vm10, %v1103_v24, %v1139_v32 }
 0x304   :  { %v1111_v16 = vrot.slane %v985_v11, %v3255_v51  ;;  %v866_v57 = vpop.xlane.xlu0 %865 }
 0x305   :  { %v988_v59 = vmul.f32 %v2343_v31, %v866_v57  ;;  %v863_v29 = vpop.xlane.xlu1 %862 }
 0x306   :  { %v987_v15 = vmul.f32 %v2345_v4, %v863_v29  ;;  %v1112_v54 = vsel %vm1025_vm4, %v1111_v16, %v1107_v56 }
 0x307   :  { %v1125_v7 = vrot.slane %v988_v59, %v3255_v51  ;;  %v1117_v2 = vsel %vm1032_vm5, %v1116_v34, %v1112_v54 }
 0x308   :  { %v1802_v43 = vpop.xlane.xlu0 %1801  ;;  %v1121_v3 = vrot.slane %v987_v15, %v3258_v44  ;;  %v1143_v14 = vsel %vm1142_vm11, %v1117_v2, %v1141_v47 }
 0x309   :  { %v869_v55 = vpop.xlane.xlu1 %868  ;;  %2348 = vrcp.f32 %v1802_v43 }
 0x30a   :  { %v989_v63 = vmul.f32 %v2347_v6, %v869_v55  ;;  %v1126_v25 = vsel %vm1025_vm4, %v1125_v7, %v1121_v3 }
 0x30c   :  { %v1130_v50 = vrot.slane %v989_v63, %v3262_v33  ;;  %v1811_v0 = vpop.xlane.xlu0 %1810 }
 0x30d   :  { %v1805_v49 = vpop.xlane.xlu1 %1804 }
 0x30e   :  { %v1131_v41 = vsel %vm1032_vm5, %v1130_v50, %v1126_v25  ;;  %2350 = vrcp.f32 %v1805_v49 }
 0x30f   :  { %v1145_v26 = vsel %vm1144_vm12, %v1131_v41, %v1143_v14  ;;  %2352 = vrcp.f32 %v1811_v0 }
 0x310   :  { %1147 = vst.msk [vmem:[#allocation2] sm:$0xff] %vm248_vm2, %v1145_v26  ;;  %v1808_v62 = vpop.xlane.xlu0 %1807 }
 0x311   :  { %v1814_v18 = vpop.xlane.xlu1 %1813  ;;  %2354 = vrcp.f32 %v1808_v62 }
 0x312   :  { %2356 = vrcp.f32 %v1814_v18 }
 0x313   :  { %v2349_v31 = vpop.eup %2348 }
 0x314   :  { %v1820_v23 = vpop.xlane.xlu0 %1819 }
 0x315   :  { %v1817_v19 = vpop.xlane.xlu1 %1816 }
 0x316   :  { %2358 = vrcp.f32 %v1817_v19 }
 0x317   :  { %2360 = vrcp.f32 %v1820_v23 }
 0x318   :  { %v1826_v13 = vpop.xlane.xlu0 %1825  ;;  %v2351_v16 = vpop.eup %2350 }
 0x319   :  { %v1823_v48 = vpop.xlane.xlu1 %1822  ;;  %2362 = vrcp.f32 %v1826_v13  ;;  %v2353_v46 = vpop.eup %2352 }
 0x31a   :  { %2364 = vrcp.f32 %v1823_v48 }
 0x31b   :  { %v2355_v45 = vpop.eup %2354 }
 0x31c   :  { %v3332_v60 = vpop.xlane.xlu0 %1831  ;;  %v2357_v56 = vpop.eup %2356 }
 0x31d   :  { %v3334_v28 = vpop.xlane.xlu1 %1828  ;;  %2366 = vrcp.f32 %v3332_v60 }
 0x31e   :  { %2368 = vrcp.f32 %v3334_v28 }
 0x320   :  { %v3336_v21 = vpop.xlane.xlu0 %1837  ;;  %v2359_v61 = vpop.eup %2358 }
 0x321   :  { %v3338_v20 = vpop.xlane.xlu1 %1834  ;;  %v2361_v24 = vpop.eup %2360  ;;  %2370 = vrcp.f32 %v3336_v21 }
 0x322   :  { %2372 = vrcp.f32 %v3338_v20 }
 0x323   :  { %v2363_v63 = vpop.eup %2362 }
 0x324   :  { %v3340_v40 = vpop.xlane.xlu0 %1843  ;;  %v2365_v50 = vpop.eup %2364 }
 0x325   :  { %v3342_v42 = vpop.xlane.xlu1 %1840 }
 0x326   :  { %2374 = vrcp.f32 %v3342_v42 }
 0x327   :  { %2376 = vrcp.f32 %v3340_v40  ;;  %v2367_v20 = vpop.eup %2366 }
 0x328   :  { %v3344_v1 = vpop.xlane.xlu0 %1849 }
 0x329   :  { %v3346_v58 = vpop.xlane.xlu1 %1846  ;;  %2378 = vrcp.f32 %v3344_v1 }
 0x32a   :  { %2380 = vrcp.f32 %v3346_v58 }
 0x32c   :  { %v3348_v27 = vpop.xlane.xlu0 %1855 }
 0x32d   :  { %v3350_v10 = vpop.xlane.xlu1 %1852  ;;  %2382 = vrcp.f32 %v3348_v27 }
 0x32e   :  { %2384 = vrcp.f32 %v3350_v10 }
 0x330   :  { %v3352_v9 = vpop.xlane.xlu0 %1861 }
 0x331   :  { %v3354_v35 = vpop.xlane.xlu1 %1858 }
 0x332   :  { %2386 = vrcp.f32 %v3354_v35 }
 0x333   :  { %2388 = vrcp.f32 %v3352_v9 }
 0x334   :  { %v3356_v11 = vpop.xlane.xlu0 %1867 }
 0x335   :  { %v3358_v52 = vpop.xlane.xlu1 %1864  ;;  %2390 = vrcp.f32 %v3356_v11 }
 0x336   :  { %2392 = vrcp.f32 %v3358_v52 }
 0x338   :  { %v1730_v38 = vpop.xlane.xlu0 %1729 }
 0x339   :  { %v3360_v22 = vpop.xlane.xlu1 %1870  ;;  %v1896_v30 = vmul.f32 %v2349_v31, %v1730_v38  ;;  %v2369_v31 = vpop.eup %2368 }
 0x33a   :  { %2394 = vrcp.f32 %v3360_v22 }
 0x33b   :  { %v1947_v37 = vrot.slane %v1896_v30, %v3258_v44 }
 0x33c   :  { %v1739_v5 = vpop.xlane.xlu0 %1738 }
 0x33d   :  { %v1733_v57 = vpop.xlane.xlu1 %1732  ;;  %v1899_v59 = vmul.f32 %v2353_v46, %v1739_v5  ;;  %v2371_v5 = vpop.eup %2370 }
 0x33e   :  { %v1897_v4 = vmul.f32 %v2351_v16, %v1733_v57  ;;  %v2373_v40 = vpop.eup %2372 }
 0x33f   :  { %v1961_v54 = vrot.slane %v1899_v59, %v3258_v44  ;;  %v2375_v1 = vpop.eup %2374 }
 0x340   :  { %v1951_v29 = vrot.slane %v1897_v4, %v3255_v51  ;;  %v1736_v53 = vpop.xlane.xlu0 %1735  ;;  %v2377_v58 = vpop.eup %2376 }
 0x341   :  { %v1898_v39 = vmul.f32 %v2355_v45, %v1736_v53  ;;  %v1742_v15 = vpop.xlane.xlu1 %1741  ;;  %v2379_v57 = vpop.eup %2378 }
 0x342   :  { %v1952_v12 = vsel %vm1025_vm4, %v1951_v29, %v1947_v37  ;;  %v1900_v17 = vmul.f32 %v2357_v56, %v1742_v15  ;;  %v2381_v46 = vpop.eup %2380 }
 0x343   :  { %v1956_v8 = vrot.slane %v1898_v39, %v3262_v33  ;;  %v2383_v35 = vpop.eup %2382 }
 0x344   :  { %v1965_v43 = vrot.slane %v1900_v17, %v3255_v51  ;;  %v1748_v6 = vpop.xlane.xlu0 %1747  ;;  %v2385_v9 = vpop.eup %2384 }
 0x345   :  { %v1957_v34 = vsel %vm1032_vm5, %v1956_v8, %v1952_v12  ;;  %v1745_v7 = vpop.xlane.xlu1 %1744  ;;  %v1902_v36 = vmul.f32 %v2361_v24, %v1748_v6  ;;  %v2387_v53 = vpop.eup %2386 }
 0x346   :  { %v1966_v3 = vsel %vm1025_vm4, %v1965_v43, %v1961_v54  ;;  %v1901_v55 = vmul.f32 %v2359_v61, %v1745_v7  ;;  %v2389_v43 = vpop.eup %2388 }
 0x347   :  { %v1975_v41 = vrot.slane %v1902_v36, %v3258_v44  ;;  %v2391_v61 = vpop.eup %2390 }
 0x348   :  { %v1970_v2 = vrot.slane %v1901_v55, %v3262_v33  ;;  %v1754_v32 = vpop.xlane.xlu0 %1753  ;;  %v2393_v24 = vpop.eup %2392 }
 0x349   :  { %v1904_v0 = vmul.f32 %v2363_v63, %v1754_v32  ;;  %v1751_v47 = vpop.xlane.xlu1 %1750 }
 0x34a   :  { %v1971_v25 = vsel %vm1032_vm5, %v1970_v2, %v1966_v3  ;;  %v1903_v49 = vmul.f32 %v2365_v50, %v1751_v47 }
 0x34b   :  { %v2056_v14 = vsel %vm1132_vm6, %v1971_v25, %v1957_v34  ;;  %v1984_v18 = vrot.slane %v1904_v0, %v3262_v33 }
 0x34c   :  { %v1979_v26 = vrot.slane %v1903_v49, %v3255_v51  ;;  %v1760_v62 = vpop.xlane.xlu0 %1759 }
 0x34d   :  { %v1757_v23 = vpop.xlane.xlu1 %1756  ;;  %v1906_v45 = vmul.f32 %v2367_v20, %v1760_v62 }
 0x34e   :  { %v1980_v19 = vsel %vm1025_vm4, %v1979_v26, %v1975_v41  ;;  %v1905_v37 = vmul.f32 %v2369_v31, %v1757_v23 }
 0x34f   :  { %v1985_v13 = vsel %vm1032_vm5, %v1984_v18, %v1980_v19  ;;  %v1993_v22 = vrot.slane %v1906_v45, %v3255_v51  ;;  %v2395_v18 = vpop.eup %2394 }
 0x350   :  { %v1766_v48 = vpop.xlane.xlu0 %1765  ;;  %v3383_v38 = vsel %vm1134_vm7, %v1985_v13, %v2056_v14  ;;  %v1989_v6 = vrot.slane %v1905_v37, %v3258_v44 }
 0x351   :  { %v1763_v60 = vpop.xlane.xlu1 %1762  ;;  %v1908_v10 = vmul.f32 %v2371_v5, %v1766_v48 }
 0x352   :  { %v1907_v59 = vmul.f32 %v2373_v40, %v1763_v60  ;;  %v1994_v14 = vsel %vm1025_vm4, %v1993_v22, %v1989_v6 }
 0x353   :  { %v2003_v52 = vrot.slane %v1908_v10, %v3258_v44 }
 0x354   :  { %v1772_v28 = vpop.xlane.xlu0 %1771  ;;  %v1998_v34 = vrot.slane %v1907_v59, %v3262_v33 }
 0x355   :  { %v1769_v21 = vpop.xlane.xlu1 %1768  ;;  %v1910_v12 = vmul.f32 %v2377_v58, %v1772_v28 }
 0x356   :  { %v1909_v27 = vmul.f32 %v2375_v1, %v1769_v21  ;;  %v1999_v41 = vsel %vm1032_vm5, %v1998_v34, %v1994_v14 }
 0x357   :  { %v2012_v0 = vrot.slane %v1910_v12, %v3262_v33  ;;  %v2058_v20 = vsel %vm1136_vm8, %v1999_v41, %v3383_v38 }
 0x358   :  { %v1778_v30 = vpop.xlane.xlu0 %1777  ;;  %v2007_v29 = vrot.slane %v1909_v27, %v3255_v51 }
 0x359   :  { %v1775_v42 = vpop.xlane.xlu1 %1774  ;;  %v1912_v56 = vmul.f32 %v2379_v57, %v1778_v30 }
 0x35a   :  { %v1911_v39 = vmul.f32 %v2381_v46, %v1775_v42  ;;  %v2008_v7 = vsel %vm1025_vm4, %v2007_v29, %v2003_v52 }
 0x35b   :  { %v2021_v63 = vrot.slane %v1912_v56, %v3255_v51  ;;  %v2013_v26 = vsel %vm1032_vm5, %v2012_v0, %v2008_v7 }
 0x35c   :  { %v1784_v16 = vpop.xlane.xlu0 %1783  ;;  %v2017_v36 = vrot.slane %v1911_v39, %v3258_v44  ;;  %v2059_v30 = vsel %vm1138_vm9, %v2013_v26, %v2058_v20 }
 0x35d   :  { %v1781_v4 = vpop.xlane.xlu1 %1780  ;;  %v1914_v17 = vmul.f32 %v2383_v35, %v1784_v16 }
 0x35e   :  { %v1913_v8 = vmul.f32 %v2385_v9, %v1781_v4  ;;  %v2022_v23 = vsel %vm1025_vm4, %v2021_v63, %v2017_v36 }
 0x35f   :  { %v2031_v47 = vrot.slane %v1914_v17, %v3258_v44 }
 0x360   :  { %v1790_v11 = vpop.xlane.xlu0 %1789  ;;  %v2026_v25 = vrot.slane %v1913_v8, %v3262_v33 }
 0x361   :  { %v1787_v15 = vpop.xlane.xlu1 %1786  ;;  %v1916_v2 = vmul.f32 %v2389_v43, %v1790_v11 }
 0x362   :  { %v1915_v54 = vmul.f32 %v2387_v53, %v1787_v15  ;;  %v2027_v28 = vsel %vm1032_vm5, %v2026_v25, %v2022_v23 }
 0x363   :  { %v2040_v19 = vrot.slane %v1916_v2, %v3262_v33  ;;  %v2060_v42 = vsel %vm1140_vm10, %v2027_v28, %v2059_v30 }
 0x364   :  { %v2035_v3 = vrot.slane %v1915_v54, %v3255_v51  ;;  %v1796_v55 = vpop.xlane.xlu0 %1795 }
 0x365   :  { %v1918_v32 = vmul.f32 %v2391_v61, %v1796_v55  ;;  %v1793_v50 = vpop.xlane.xlu1 %1792 }
 0x366   :  { %v1917_v49 = vmul.f32 %v2393_v24, %v1793_v50  ;;  %v2036_v62 = vsel %vm1025_vm4, %v2035_v3, %v2031_v47 }
 0x367   :  { %v2049_v13 = vrot.slane %v1918_v32, %v3255_v51  ;;  %v2041_v31 = vsel %vm1032_vm5, %v2040_v19, %v2036_v62 }
 0x368   :  { %v2045_v48 = vrot.slane %v1917_v49, %v3258_v44  ;;  %v2061_v44 = vsel %vm1142_vm11, %v2041_v31, %v2060_v42 }
 0x369   :  { %v1799_v60 = vpop.xlane.xlu1 %1798 }
 0x36a   :  { %v1919_v21 = vmul.f32 %v2395_v18, %v1799_v60  ;;  %v2050_v51 = vsel %vm1025_vm4, %v2049_v13, %v2045_v48 }
 0x36c   :  { %v2054_v5 = vrot.slane %v1919_v21, %v3262_v33 }
 0x36e   :  { %v2055_v40 = vsel %vm1032_vm5, %v2054_v5, %v2050_v51 }
 0x36f   :  { %v2062_v1 = vsel %vm1144_vm12, %v2055_v40, %v2061_v44 }
 0x370   :  { %2064 = vst.msk [vmem:[#allocation2 + $0x8] sm:$0xff] %vm248_vm2, %v2062_v1 }
 0x371   :  { %2407 = shalt.err (!%p2404_p4)
}
 0x372   :  { %s2408_s18 = scalar_lea.hbm %s3444_s4, 256 }
 0x373   :  { %p2409_p5 = scmp.ne.s32.totalorder %s3444_s4, %s2408_s18  ;;  %p2412_p6 = scmp.lt.u32.totalorder %s2408_s18, %s3444_s4 }
 0x375   :  { %p2414_p7 = pnand %p2412_p6, %p2409_p5 }
 0x377   :  { %2417 = shalt.err (!%p2414_p7)
}
 0x378   :  { %s2425_s23 = smov 128   ;;  %s2426_s24 = smov 8  }
 0x379   :  { %2076 = dma.vmem_to_hbm [thread:$0]  %s2071_s3, 256, %s3444_s4, [#allocation3], %s2425_s23, %s2425_s23, %s2426_s24  }
 0x37a   :  { %2418 = dma.done.wait [#allocation3], 256  }
 0x37b   :  { %2419 = vsyncadd [#allocation3], 4294967040 }
 0x37c   :  { %2080 = vsyncpa [#allocation3], 1 }

</bundles_post_ra>
